<compile_context>
chip_gen: v6e
topology: v6e:2x2x1
jax: 0.10.0
libtpu: 0.0.40
codegen_flags: <defaults>
</compile_context>

<pallas_src>
import jax
import jax.numpy as jnp
from jax.experimental import pallas as pl
from jax.experimental.pallas import tpu as pltpu


def _round_up(x, m):
    return ((x + m - 1) // m) * m


def sparsemax_loss_kernel(logits_ref, target_ref, loss_ref):
    z = logits_ref[...].astype(jnp.float32)   # (TB, Dp)
    t = target_ref[...].astype(jnp.float32)   # (TB, Dp)
    TB, _ = z.shape

    # _handle_neginf: -inf -> finfo.min (class-padding columns already arrive
    # as finfo.min from the wrapper).
    neg_min = jnp.finfo(jnp.float32).min
    z = jnp.where(z == -jnp.inf, neg_min, z)

    # ---- sort-free sparsemax support, pure f32 VPU sublane reductions ----
    # For every class i:
    #   c_i = #{j : z_j >= z_i}          (1-based descending rank; ties share it)
    #   s_i = sum_{j : z_j >= z_i} z_j   (prefix sum at that rank)
    zj = z[:, :, None]                                         # (TB, Dp, 1)
    mask = (zj >= z[:, None, :]).astype(jnp.float32)           # (TB, Dp, Dp)
    c = jnp.sum(mask, axis=-2)                                 # (TB, Dp)
    s = jnp.sum(mask * zj, axis=-2)                            # (TB, Dp)

    # Support condition 1 + r*z_(r) > S_r.  It is identical at all tied ranks,
    # so the pairwise (sort-free) form matches the sorted reference exactly.
    ind = (1.0 + c * z) > s                                    # (TB, Dp)

    # k, sum(z), sum(z^2) over the support: exact f32 lane reductions.
    k = jnp.sum(ind.astype(jnp.float32), axis=-1, keepdims=True)        # (TB, 1)
    sum_top = jnp.sum(jnp.where(ind, z, 0.0), axis=-1, keepdims=True)
    sum_sq_top = jnp.sum(jnp.where(ind, z * z, 0.0), axis=-1, keepdims=True)
    k_safe = jnp.maximum(k, 1.0)          # guard degenerate all-sentinel rows
    tau = (sum_top - 1.0) / k_safe
    sum_s = 0.5 * (sum_sq_top - k_safe * tau * tau)                      # (TB, 1)

    # _q_part (after -inf masking only +inf can remain infinite, as in torch).
    q = t * (0.5 * t - z)
    q = jnp.where((t == 0.0) & (z == jnp.inf), 0.0, q)
    q_part = jnp.sum(q, axis=-1, keepdims=True)                          # (TB, 1)

    # Lane-broadcast store: full unmasked vregs, no transpose; wrapper reads
    # lane 0 of each row.
    loss_ref[...] = jnp.broadcast_to(sum_s + q_part, (TB, 128)).astype(loss_ref.dtype)


def _pick_b_tile(B, Dp):
    # Dominant VMEM consumer: the (b_tile, Dp, Dp) pairwise broadcast/compare/
    # select temporaries.  Assume ~24 B/elem (a handful of f32-sized temps live
    # at once) and keep the peak near ~24 MiB so the kernel fits scoped VMEM on
    # every generation, including v7x's 64 MiB part.
    budget = 24 * 1024 * 1024
    cap = budget // (24 * Dp * Dp)
    cap = max(8, (cap // 8) * 8)
    if cap >= 256:
        cap = (cap // 128) * 128          # lane-aligned tiles when affordable
    b_tile = min(cap, _round_up(B, 8))
    # Ensure >= 2 grid tiles for non-tiny batches so ("parallel",) can spread
    # the grid across both v7x TensorCores (no-op on single-TC v5e/v6e).
    if b_tile >= _round_up(B, 8) and B >= 16:
        b_tile = min(b_tile, _round_up(pl.cdiv(B, 2), 8))
    return max(8, b_tile)


def sparsemax_loss(output, target, reduce=True):
    """Pallas implementation of SparsemaxLoss.forward (target_indices=False)."""
    B, D = output.shape
    Dp = _round_up(max(D, 128), 128)
    b_tile = _pick_b_tile(B, Dp)
    Bp = _round_up(B, b_tile)
    n_tiles = Bp // b_tile

    # Pad in the caller dtype (no f32 upcast in the wrapper; kernel casts).
    z_in = output
    t_in = target
    if Dp > D:
        # Padding classes with finfo.min / 0 never enters the support or q_part.
        pad_val = float(jnp.finfo(output.dtype).min)
        z_in = jnp.pad(z_in, ((0, 0), (0, Dp - D)), constant_values=pad_val)
        t_in = jnp.pad(t_in, ((0, 0), (0, Dp - D)))
    if Bp > B:
        z_in = jnp.pad(z_in, ((0, Bp - B), (0, 0)))
        t_in = jnp.pad(t_in, ((0, Bp - B), (0, 0)))

    out = pl.pallas_call(
        sparsemax_loss_kernel,
        out_shape=jax.ShapeDtypeStruct((Bp, 128), jnp.float32),
        grid_spec=pltpu.PrefetchScalarGridSpec(
            num_scalar_prefetch=0,
            grid=(n_tiles,),
            in_specs=[
                pl.BlockSpec((b_tile, Dp), lambda i: (i, 0)),
                pl.BlockSpec((b_tile, Dp), lambda i: (i, 0)),
            ],
            out_specs=pl.BlockSpec((b_tile, 128), lambda i: (i, 0)),
        ),
        compiler_params=pltpu.CompilerParams(
            dimension_semantics=("parallel",),
            vmem_limit_bytes=48 * 1024 * 1024,
        ),
        cost_estimate=pl.CostEstimate(
            flops=4 * Bp * Dp * Dp,
            transcendentals=0,
            bytes_accessed=int(Bp * Dp * (z_in.dtype.itemsize + t_in.dtype.itemsize)
                               + Bp * 128 * 4),
        ),
    )(z_in, t_in)

    per_row = out[:B, 0]                                        # (B,)
    return per_row.mean() if reduce else per_row


def sparsemax_loss_ref(output, target, reduce=True):
    """Pure-JAX reference, mirroring the PyTorch (sorted) formulation."""
    z = jnp.where(output == -jnp.inf, jnp.finfo(output.dtype).min, output)
    D = z.shape[-1]
    z_sorted = -jnp.sort(-z, axis=-1)                           # descending
    r = jnp.arange(1, D + 1, dtype=z.dtype)
    cs = jnp.cumsum(z_sorted, axis=-1)
    cond = 1.0 + r * z_sorted > cs
    k = cond.sum(axis=-1).astype(jnp.int32)
    S_k = jnp.take_along_axis(cs, (k - 1)[..., None], axis=-1)[..., 0]
    tau = (S_k - 1.0) / k.astype(z.dtype)
    cs2 = jnp.cumsum(z_sorted ** 2 - tau[..., None] ** 2, axis=-1)
    sum_s = 0.5 * jnp.take_along_axis(cs2, (k - 1)[..., None], axis=-1)[..., 0]
    q = target * (0.5 * target - z)
    q = jnp.where((target == 0.0) & jnp.isinf(z), 0.0, q)
    q_part = q.sum(axis=-1)
    loss = sum_s + q_part
    return loss.mean() if reduce else loss


if __name__ == "__main__":
    B, D = 8, 32
    key = jax.random.PRNGKey(0)
    k1, k2 = jax.random.split(key)
    logits = jax.random.normal(k1, (B, D), dtype=jnp.float32) * 2.0
    # label probability vectors (target_indices=False)
    target = jax.nn.softmax(jax.random.normal(k2, (B, D), dtype=jnp.float32), axis=-1)

    loss = sparsemax_loss(logits, target, reduce=True)
    jax.block_until_ready(loss)
    ref = sparsemax_loss_ref(logits, target, reduce=True)
    assert jnp.allclose(loss, ref, rtol=2e-5, atol=2e-5), (loss, ref)

    per_row = sparsemax_loss(logits, target, reduce=False)
    jax.block_until_ready(per_row)
    per_row_ref = sparsemax_loss_ref(logits, target, reduce=False)
    assert jnp.allclose(per_row, per_row_ref, rtol=2e-5, atol=2e-5), (per_row, per_row_ref)

    print("KERNEL_OK")
</pallas_src>

<mosaic_0001>
module attributes {stable_mosaic.version = 11 : i64} {
  func.func @sparsemax_loss_kernel(%arg0: i32, %arg1: memref<8x128xf32, #tpu.memory_space<vmem>>, %arg2: memref<8x128xf32, #tpu.memory_space<vmem>>, %arg3: memref<8x128xf32, #tpu.memory_space<vmem>>) attributes {dimension_semantics = [#tpu.dimension_semantics<parallel>], iteration_bounds = array<i64: 1>, scalar_prefetch = 0 : i64, scratch_operands = 0 : i64, tpu.core_type = #tpu.core_type<tc>, window_params = [{transform_indices = @transform_0, window_bounds = array<i64: 8, 128>}, {transform_indices = @transform_1, window_bounds = array<i64: 8, 128>}, {transform_indices = @transform_2, window_bounds = array<i64: 8, 128>}]} {
    %c0 = arith.constant 0 : index
    %c0_0 = arith.constant 0 : index
    %0 = vector.load %arg1[%c0, %c0_0] : memref<8x128xf32, #tpu.memory_space<vmem>>, vector<8x128xf32>
    %c0_1 = arith.constant 0 : index
    %c0_2 = arith.constant 0 : index
    %1 = vector.load %arg2[%c0_1, %c0_2] : memref<8x128xf32, #tpu.memory_space<vmem>>, vector<8x128xf32>
    %cst = arith.constant 0xFF800000 : f32
    %2 = vector.broadcast %cst : f32 to vector<8x128xf32>
    %3 = arith.cmpf oeq, %0, %2 : vector<8x128xf32>
    %cst_3 = arith.constant -3.40282347E+38 : f32
    %4 = vector.broadcast %cst_3 : f32 to vector<8x128xf32>
    %5 = arith.select %3, %4, %0 : vector<8x128xi1>, vector<8x128xf32>
    %6 = vector.shape_cast %5 : vector<8x128xf32> to vector<8x128x1xf32>
    %7 = vector.shape_cast %5 : vector<8x128xf32> to vector<8x1x128xf32>
    %8 = vector.broadcast %6 : vector<8x128x1xf32> to vector<8x128x128xf32>
    %9 = vector.broadcast %7 : vector<8x1x128xf32> to vector<8x128x128xf32>
    %10 = arith.cmpf oge, %8, %9 : vector<8x128x128xf32>
    %11 = arith.extui %10 : vector<8x128x128xi1> to vector<8x128x128xi32>
    %12 = arith.sitofp %11 : vector<8x128x128xi32> to vector<8x128x128xf32>
    %cst_4 = arith.constant dense<0.000000e+00> : vector<8x128xf32>
    %13 = vector.multi_reduction <add>, %12, %cst_4 [1] : vector<8x128x128xf32> to vector<8x128xf32>
    %14 = vector.broadcast %6 : vector<8x128x1xf32> to vector<8x128x128xf32>
    %15 = arith.mulf %12, %14 : vector<8x128x128xf32>
    %cst_5 = arith.constant dense<0.000000e+00> : vector<8x128xf32>
    %16 = vector.multi_reduction <add>, %15, %cst_5 [1] : vector<8x128x128xf32> to vector<8x128xf32>
    %17 = arith.mulf %13, %5 : vector<8x128xf32>
    %cst_6 = arith.constant 1.000000e+00 : f32
    %18 = vector.broadcast %cst_6 : f32 to vector<8x128xf32>
    %19 = arith.addf %18, %17 : vector<8x128xf32>
    %20 = arith.cmpf ogt, %19, %16 : vector<8x128xf32>
    %21 = arith.extui %20 : vector<8x128xi1> to vector<8x128xi32>
    %22 = arith.sitofp %21 : vector<8x128xi32> to vector<8x128xf32>
    %cst_7 = arith.constant dense<0.000000e+00> : vector<8xf32>
    %23 = vector.multi_reduction <add>, %22, %cst_7 [1] : vector<8x128xf32> to vector<8xf32>
    %24 = vector.shape_cast %23 : vector<8xf32> to vector<8x1xf32>
    %cst_8 = arith.constant 0.000000e+00 : f32
    %25 = vector.broadcast %cst_8 : f32 to vector<8x128xf32>
    %26 = arith.select %20, %5, %25 : vector<8x128xi1>, vector<8x128xf32>
    %cst_9 = arith.constant dense<0.000000e+00> : vector<8xf32>
    %27 = vector.multi_reduction <add>, %26, %cst_9 [1] : vector<8x128xf32> to vector<8xf32>
    %28 = vector.shape_cast %27 : vector<8xf32> to vector<8x1xf32>
    %29 = arith.mulf %5, %5 : vector<8x128xf32>
    %cst_10 = arith.constant 0.000000e+00 : f32
    %30 = vector.broadcast %cst_10 : f32 to vector<8x128xf32>
    %31 = arith.select %20, %29, %30 : vector<8x128xi1>, vector<8x128xf32>
    %cst_11 = arith.constant dense<0.000000e+00> : vector<8xf32>
    %32 = vector.multi_reduction <add>, %31, %cst_11 [1] : vector<8x128xf32> to vector<8xf32>
    %33 = vector.shape_cast %32 : vector<8xf32> to vector<8x1xf32>
    %cst_12 = arith.constant 1.000000e+00 : f32
    %34 = vector.broadcast %cst_12 : f32 to vector<8x1xf32>
    %35 = arith.maximumf %24, %34 : vector<8x1xf32>
    %cst_13 = arith.constant 1.000000e+00 : f32
    %36 = vector.broadcast %cst_13 : f32 to vector<8x1xf32>
    %37 = arith.subf %28, %36 : vector<8x1xf32>
    %38 = arith.divf %37, %35 : vector<8x1xf32>
    %39 = arith.mulf %35, %38 : vector<8x1xf32>
    %40 = arith.mulf %39, %38 : vector<8x1xf32>
    %41 = arith.subf %33, %40 : vector<8x1xf32>
    %cst_14 = arith.constant 5.000000e-01 : f32
    %42 = vector.broadcast %cst_14 : f32 to vector<8x1xf32>
    %43 = arith.mulf %42, %41 : vector<8x1xf32>
    %cst_15 = arith.constant 5.000000e-01 : f32
    %44 = vector.broadcast %cst_15 : f32 to vector<8x128xf32>
    %45 = arith.mulf %44, %1 : vector<8x128xf32>
    %46 = arith.subf %45, %5 : vector<8x128xf32>
    %47 = arith.mulf %1, %46 : vector<8x128xf32>
    %cst_16 = arith.constant 0.000000e+00 : f32
    %48 = vector.broadcast %cst_16 : f32 to vector<8x128xf32>
    %49 = arith.cmpf oeq, %1, %48 : vector<8x128xf32>
    %cst_17 = arith.constant 0x7F800000 : f32
    %50 = vector.broadcast %cst_17 : f32 to vector<8x128xf32>
    %51 = arith.cmpf oeq, %5, %50 : vector<8x128xf32>
    %52 = arith.andi %49, %51 : vector<8x128xi1>
    %cst_18 = arith.constant 0.000000e+00 : f32
    %53 = vector.broadcast %cst_18 : f32 to vector<8x128xf32>
    %54 = arith.select %52, %53, %47 : vector<8x128xi1>, vector<8x128xf32>
    %cst_19 = arith.constant dense<0.000000e+00> : vector<8xf32>
    %55 = vector.multi_reduction <add>, %54, %cst_19 [1] : vector<8x128xf32> to vector<8xf32>
    %56 = vector.shape_cast %55 : vector<8xf32> to vector<8x1xf32>
    %57 = arith.addf %43, %56 : vector<8x1xf32>
    %58 = vector.shape_cast %57 : vector<8x1xf32> to vector<8x1xf32>
    %59 = vector.broadcast %58 : vector<8x1xf32> to vector<8x128xf32>
    %c0_20 = arith.constant 0 : index
    %c0_21 = arith.constant 0 : index
    %60 = vector.load %arg3[%c0_20, %c0_21] : memref<8x128xf32, #tpu.memory_space<vmem>>, vector<8x128xf32>
    tpu.vector_store %arg3[%c0_20, %c0_21], %59 {strides = array<i32>} : memref<8x128xf32, #tpu.memory_space<vmem>>, vector<8x128xf32>,
    return
  }
  func.func @transform_0(%arg0: i32) -> (i32, i32) {
    %c0_i32 = arith.constant 0 : i32
    %c0_i32_0 = arith.constant 0 : i32
    return %arg0, %c0_i32 : i32, i32
  }
  func.func @transform_1(%arg0: i32) -> (i32, i32) {
    %c0_i32 = arith.constant 0 : i32
    %c0_i32_0 = arith.constant 0 : i32
    return %arg0, %c0_i32 : i32, i32
  }
  func.func @transform_2(%arg0: i32) -> (i32, i32) {
    %c0_i32 = arith.constant 0 : i32
    %c0_i32_0 = arith.constant 0 : i32
    return %arg0, %c0_i32 : i32, i32
  }
}

</mosaic_0001>

<bundles_post_ra>
// kernel: tpu_custom_call.1
= control target key start
LH: loop header
LB: loop body
LE: loop exit
PB: predicated region body
PF: predicated region fallthrough
CT: control target
= control target key end

     0   :  { %7 = vsyncpa [#allocation3], 0  ;;  %s2841_s0 = inlined_call_operand.hbm [shape: f32[8,128], index: 0, kind: input, shape index: {}]   ;;  %s2842_s1 = inlined_call_operand.hbm [shape: f32[8,128], index: 1, kind: input, shape index: {}]   ;;  %s2843_s2 = inlined_call_operand.hbm [shape: f32[8,128], index: 2, kind: output, shape index: {}]  }
   0x1   :  { %8 = vsyncpa [#allocation6], 0 }
   0x2   :  { %9 = vsyncpa [#allocation4], 0  ;;  %s1929_s9 = smov [#allocation2]   ;;  %s1930_s11 = smov [#allocation5]  }
   0x3   :  { %s16_s10 = sshll.u32 %s1929_s9, 4  ;;  %s26_s12 = sshll.u32 %s1930_s11, 4  ;;  %s17_s10 = int_to_ptr.vmem [resolvable:$true] %s16_s10  ;;  %s27_s12 = int_to_ptr.vmem [resolvable:$true] %s26_s12 }
   0x4   :  { %s1871_s13 = scalar_lea.vmem %s17_s10, 128  ;;  %p1876_p1 = scmp.lt.s32.totalorder %s17_s10, %s17_s10 }
   0x5   :  { %p1872_p0 = scmp.ne.s32.totalorder %s17_s10, %s1871_s13  ;;  %p1877_p2 = scmp.lt.s32.totalorder %s1871_s13, %s1871_s13 }
   0x7   :  { %p1878_p3 = por %p1877_p2, %p1876_p1 }
   0x9   :  { %p1879_p4 = pnand %p1878_p3, %p1872_p0 }
   0xb   :  { %1882 = shalt.err (!%p1879_p4)
}
   0xc   :  { %19 = dma.hbm_to_vmem [thread:$0]  %s2841_s0, 128, %s17_s10, [#allocation3]  }
   0xd   :  { %s1891_s16 = scalar_lea.vmem %s27_s12, 128  ;;  %p1896_p6 = scmp.lt.s32.totalorder %s27_s12, %s27_s12 }
   0xe   :  { %p1892_p5 = scmp.ne.s32.totalorder %s27_s12, %s1891_s16  ;;  %p1897_p7 = scmp.lt.s32.totalorder %s1891_s16, %s1891_s16 }
  0x10   :  { %p1898_p8 = por %p1897_p7, %p1896_p6 }
  0x12   :  { %p1899_p9 = pnand %p1898_p8, %p1892_p5 }
  0x14   :  { %1902 = shalt.err (!%p1899_p9)
}
  0x15   :  { %29 = dma.hbm_to_vmem [thread:$0]  %s2842_s1, 128, %s27_s12, [#allocation6]  }
  0x16   :  { %1923 = dma.done.wait [#allocation3], 128  }
  0x17   :  { %1924 = vsyncadd [#allocation3], 4294967168 }
  0x18   :  { %1925 = dma.done.wait [#allocation6], 128  }
  0x19   :  { %1926 = vsyncadd [#allocation6], 4294967168  ;;  %v40_v0 = vlaneseq  ;;  %v36_v3 = vld [vmem:[#allocation2] sm:$0xff]  ;;  %v1931_v40 = vmov 1966171168   ;;  %s1933_s0 = smov [#allocation7]  }
  0x1a   :  { %vm38_vm0 = vcmp.eq.f32.partialorder %v36_v3, -inf  ;;  %v579_v41 = vunpack.c.l.s4 %v1931_v40  ;;  %s1709_s1 = sshll.u32 %s1933_s0, 4  ;;  %s1710_s1 = int_to_ptr.vmem [resolvable:$true] %s1709_s1 }
  0x1b   :  { %v1955_v1 = vshrl.u32 %v40_v0, 7  ;;  %v1960_v4 = vsel %vm38_vm0, -3.4028235e+38, %v36_v3  ;;  %s1903_s19 = scalar_lea.vmem %s1710_s1, 128  ;;  %p1908_p11 = scmp.lt.s32.totalorder %s1710_s1, %s1710_s1 }
  0x1c   :  { %2860 = vst [vmem:[#allocation11_spill] sm:$0xff] %v1960_v4  ;;  %v580_v44 = vunpack.c.0.s8 %v579_v41  ;;  %v577_v57 = vcombine.high %v1960_v4, %v1960_v4  ;;  %p1904_p10 = scmp.ne.s32.totalorder %s1710_s1, %s1903_s19  ;;  %p1909_p12 = scmp.lt.s32.totalorder %s1903_s19, %s1903_s19 }
  0x1d   :  { %v1958_v2 = vsub.s32 0, %v1955_v1  ;;  %v109_v6 = vsub.s32 1, %v1955_v1  ;;  %v176_v8 = vsub.s32 2, %v1955_v1  ;;  %v243_v10 = vsub.s32 3, %v1955_v1 }
  0x1e   :  { %v310_v12 = vsub.s32 4, %v1955_v1  ;;  %v377_v14 = vsub.s32 5, %v1955_v1  ;;  %v444_v16 = vsub.s32 6, %v1955_v1  ;;  %v511_v18 = vsub.s32 7, %v1955_v1  ;;  %p1910_p13 = por %p1909_p12, %p1908_p11 }
  0x1f   :  { %v43_v5 = vrot.slane %v1960_v4, %v1958_v2  ;;  %v110_v7 = vrot.slane %v1960_v4, %v109_v6  ;;  %v1968_v9 = vrot.slane %v1960_v4, %v176_v8  ;;  %v1974_v11 = vrot.slane %v1960_v4, %v243_v10 }
  0x20   :  { %v1980_v13 = vrot.slane %v1960_v4, %v310_v12  ;;  %v1988_v15 = vrot.slane %v1960_v4, %v377_v14  ;;  %v1996_v17 = vrot.slane %v1960_v4, %v444_v16  ;;  %v2004_v19 = vrot.slane %v1960_v4, %v511_v18  ;;  %p1911_p0 = pnand %p1910_p13, %p1904_p10 }
  0x21   :  { %53 = vbcast.lane.b32.xlu1 %v43_v5, 272  ;;  %45 = vbcast.lane.b32.xlu0 %v43_v5, 256  ;;  %v583_v47 = vsub.s32 %v580_v44, %v1955_v1 }
  0x23   :  { %v584_v50 = vrot.slane %v1960_v4, %v583_v47  ;;  %v591_v62 = vrot.slane %v577_v57, %v583_v47 }
  0x25   :  { %57 = vbcast.lane.b32.xlu1 %v43_v5, 280  ;;  %49 = vbcast.lane.b32.xlu0 %v43_v5, 264  ;;  %v2102_v53 = vrot.slane %v584_v50, %v583_v47  ;;  %v592_v54 = vcombine.high %v584_v50, %v584_v50  ;;  %v593_v50 = vcombine.high %v591_v62, %v591_v62 }
  0x27   :  { %v622_v58 = vcombine.high %v2102_v53, %v2102_v53  ;;  %v2114_v59 = vrot.slane %v592_v54, %v583_v47 }
  0x29   :  { %65 = vbcast.lane.b32.xlu1 %v43_v5, 296  ;;  %61 = vbcast.lane.b32.xlu0 %v43_v5, 288  ;;  %v2121_v63 = vrot.slane %v622_v58, %v1958_v2  ;;  %v624_v0 = vcombine.high %v2114_v59, %v2114_v59 }
  0x2b   :  { %v2132_v6 = vrot.slane %v624_v0, %v1958_v2 }
  0x2d   :  { %73 = vbcast.lane.b32.xlu1 %v43_v5, 312  ;;  %69 = vbcast.lane.b32.xlu0 %v43_v5, 304 }
  0x31   :  { %81 = vbcast.lane.b32.xlu1 %v43_v5, 328  ;;  %77 = vbcast.lane.b32.xlu0 %v43_v5, 320 }
  0x35   :  { %89 = vbcast.lane.b32.xlu1 %v43_v5, 344  ;;  %85 = vbcast.lane.b32.xlu0 %v43_v5, 336 }
  0x39   :  { %97 = vbcast.lane.b32.xlu1 %v43_v5, 360  ;;  %93 = vbcast.lane.b32.xlu0 %v43_v5, 352 }
  0x3d   :  { %105 = vbcast.lane.b32.xlu1 %v43_v5, 376  ;;  %101 = vbcast.lane.b32.xlu0 %v43_v5, 368  ;;  %v2127_v5 = vrot.slane %v591_v62, %v583_v47 }
  0x3f   :  { %v2140_v41 = vrot.slane %v2127_v5, %v1958_v2 }
  0x41   :  { %116 = vbcast.lane.b32.xlu1 %v110_v7, 264  ;;  %112 = vbcast.lane.b32.xlu0 %v110_v7, 256 }
  0x45   :  { %124 = vbcast.lane.b32.xlu1 %v110_v7, 280  ;;  %120 = vbcast.lane.b32.xlu0 %v110_v7, 272 }
  0x49   :  { %132 = vbcast.lane.b32.xlu1 %v110_v7, 296  ;;  %128 = vbcast.lane.b32.xlu0 %v110_v7, 288 }
  0x4d   :  { %140 = vbcast.lane.b32.xlu1 %v110_v7, 312  ;;  %136 = vbcast.lane.b32.xlu0 %v110_v7, 304 }
  0x51   :  { %148 = vbcast.lane.b32.xlu1 %v110_v7, 328  ;;  %144 = vbcast.lane.b32.xlu0 %v110_v7, 320 }
  0x55   :  { %156 = vbcast.lane.b32.xlu1 %v110_v7, 344  ;;  %152 = vbcast.lane.b32.xlu0 %v110_v7, 336 }
  0x59   :  { %164 = vbcast.lane.b32.xlu1 %v110_v7, 360  ;;  %160 = vbcast.lane.b32.xlu0 %v110_v7, 352 }
  0x5d   :  { %172 = vbcast.lane.b32.xlu1 %v110_v7, 376  ;;  %168 = vbcast.lane.b32.xlu0 %v110_v7, 368  ;;  %v2856_v7 = vmov 0.0  }
  0x61   :  { %183 = vbcast.lane.b32.xlu1 %v1968_v9, 264  ;;  %179 = vbcast.lane.b32.xlu0 %v1968_v9, 256 }
  0x65   :  { %250 = vbcast.lane.b32.xlu1 %v1974_v11, 264  ;;  %246 = vbcast.lane.b32.xlu0 %v1974_v11, 256 }
  0x69   :  { %313 = vbcast.lane.b32.xlu1 %v1980_v13, 256  ;;  %187 = vbcast.lane.b32.xlu0 %v1968_v9, 272 }
  0x6d   :  { %254 = vbcast.lane.b32.xlu1 %v1974_v11, 272  ;;  %317 = vbcast.lane.b32.xlu0 %v1980_v13, 264 }
  0x71   :  { %384 = vbcast.lane.b32.xlu1 %v1988_v15, 264  ;;  %380 = vbcast.lane.b32.xlu0 %v1988_v15, 256 }
  0x75   :  { %321 = vbcast.lane.b32.xlu1 %v1980_v13, 272  ;;  %191 = vbcast.lane.b32.xlu0 %v1968_v9, 280 }
  0x79   :  { %451 = vbcast.lane.b32.xlu1 %v1996_v17, 264  ;;  %447 = vbcast.lane.b32.xlu0 %v1996_v17, 256 }
  0x7d   :  { %388 = vbcast.lane.b32.xlu1 %v1988_v15, 272  ;;  %258 = vbcast.lane.b32.xlu0 %v1974_v11, 280 }
  0x81   :  { %518 = vbcast.lane.b32.xlu1 %v2004_v19, 264  ;;  %514 = vbcast.lane.b32.xlu0 %v2004_v19, 256 }
  0x85   :  { %325 = vbcast.lane.b32.xlu1 %v1980_v13, 280  ;;  %195 = vbcast.lane.b32.xlu0 %v1968_v9, 288 }
  0x89   :  { %262 = vbcast.lane.b32.xlu1 %v1974_v11, 288  ;;  %455 = vbcast.lane.b32.xlu0 %v1996_v17, 272 }
  0x8d   :  { %522 = vbcast.lane.b32.xlu1 %v2004_v19, 272  ;;  %392 = vbcast.lane.b32.xlu0 %v1988_v15, 280 }
  0x91   :  { %329 = vbcast.lane.b32.xlu1 %v1980_v13, 288  ;;  %199 = vbcast.lane.b32.xlu0 %v1968_v9, 296 }
  0x93   :  { %v2016_v20 = vpop.permute.xlu1 %53  ;;  %v2018_v21 = vpop.permute.xlu0 %45 }
  0x95   :  { %266 = vbcast.lane.b32.xlu1 %v1974_v11, 296  ;;  %459 = vbcast.lane.b32.xlu0 %v1996_v17, 280 }
  0x97   :  { %v2022_v22 = vpop.permute.xlu1 %57  ;;  %v2024_v23 = vpop.permute.xlu0 %49 }
  0x99   :  { %526 = vbcast.lane.b32.xlu1 %v2004_v19, 280  ;;  %396 = vbcast.lane.b32.xlu0 %v1988_v15, 288 }
  0x9b   :  { %v2028_v24 = vpop.permute.xlu1 %65  ;;  %v2030_v25 = vpop.permute.xlu0 %61 }
  0x9d   :  { %333 = vbcast.lane.b32.xlu1 %v1980_v13, 296  ;;  %203 = vbcast.lane.b32.xlu0 %v1968_v9, 304 }
  0x9f   :  { %v2034_v26 = vpop.permute.xlu1 %73  ;;  %v2036_v27 = vpop.permute.xlu0 %69 }
  0xa1   :  { %270 = vbcast.lane.b32.xlu1 %v1974_v11, 304  ;;  %463 = vbcast.lane.b32.xlu0 %v1996_v17, 288 }
  0xa3   :  { %v2040_v28 = vpop.permute.xlu1 %81  ;;  %v2042_v29 = vpop.permute.xlu0 %77 }
  0xa5   :  { %530 = vbcast.lane.b32.xlu1 %v2004_v19, 288  ;;  %400 = vbcast.lane.b32.xlu0 %v1988_v15, 296 }
  0xa7   :  { %v2046_v30 = vpop.permute.xlu1 %89  ;;  %v2048_v31 = vpop.permute.xlu0 %85 }
  0xa9   :  { %337 = vbcast.lane.b32.xlu1 %v1980_v13, 304  ;;  %207 = vbcast.lane.b32.xlu0 %v1968_v9, 312 }
  0xab   :  { %v2052_v32 = vpop.permute.xlu1 %97  ;;  %v2054_v33 = vpop.permute.xlu0 %93 }
  0xad   :  { %274 = vbcast.lane.b32.xlu1 %v1974_v11, 312  ;;  %467 = vbcast.lane.b32.xlu0 %v1996_v17, 296 }
  0xaf   :  { %v2058_v34 = vpop.permute.xlu1 %105  ;;  %v2060_v35 = vpop.permute.xlu0 %101 }
  0xb0   :  { %2861 = vst [vmem:[#allocation12_spill] sm:$0xff] %v2058_v34  ;;  %2862 = vst [vmem:[#allocation13_spill] sm:$0xff] %v2060_v35 }
  0xb1   :  { %534 = vbcast.lane.b32.xlu1 %v2004_v19, 296  ;;  %404 = vbcast.lane.b32.xlu0 %v1988_v15, 304 }
  0xb3   :  { %v2064_v36 = vpop.permute.xlu1 %116  ;;  %v2066_v37 = vpop.permute.xlu0 %112 }
  0xb5   :  { %341 = vbcast.lane.b32.xlu1 %v1980_v13, 312  ;;  %211 = vbcast.lane.b32.xlu0 %v1968_v9, 320 }
  0xb7   :  { %v2070_v38 = vpop.permute.xlu1 %124  ;;  %v2072_v39 = vpop.permute.xlu0 %120 }
  0xb9   :  { %278 = vbcast.lane.b32.xlu1 %v1974_v11, 320  ;;  %471 = vbcast.lane.b32.xlu0 %v1996_v17, 304 }
  0xbb   :  { %v2076_v42 = vpop.permute.xlu1 %132  ;;  %v2078_v43 = vpop.permute.xlu0 %128 }
  0xbd   :  { %538 = vbcast.lane.b32.xlu1 %v2004_v19, 304  ;;  %408 = vbcast.lane.b32.xlu0 %v1988_v15, 312 }
  0xbf   :  { %v2082_v45 = vpop.permute.xlu1 %140  ;;  %v2084_v46 = vpop.permute.xlu0 %136 }
  0xc0   :  { %2863 = vst [vmem:[#allocation14_spill] sm:$0xff] %v2082_v45  ;;  %2864 = vst [vmem:[#allocation15_spill] sm:$0xff] %v2084_v46 }
  0xc1   :  { %345 = vbcast.lane.b32.xlu1 %v1980_v13, 320  ;;  %215 = vbcast.lane.b32.xlu0 %v1968_v9, 328 }
  0xc3   :  { %v2089_v48 = vpop.permute.xlu1 %148  ;;  %v2091_v49 = vpop.permute.xlu0 %144 }
  0xc4   :  { %2865 = vst [vmem:[#allocation16_spill] sm:$0xff] %v2089_v48  ;;  %2866 = vst [vmem:[#allocation17_spill] sm:$0xff] %v2091_v49 }
  0xc5   :  { %282 = vbcast.lane.b32.xlu1 %v1974_v11, 328  ;;  %475 = vbcast.lane.b32.xlu0 %v1996_v17, 312 }
  0xc7   :  { %v2096_v51 = vpop.permute.xlu1 %156  ;;  %v2098_v52 = vpop.permute.xlu0 %152 }
  0xc8   :  { %2867 = vst [vmem:[#allocation18_spill] sm:$0xff] %v2096_v51  ;;  %2868 = vst [vmem:[#allocation19_spill] sm:$0xff] %v2098_v52 }
  0xc9   :  { %542 = vbcast.lane.b32.xlu1 %v2004_v19, 312  ;;  %412 = vbcast.lane.b32.xlu0 %v1988_v15, 320 }
  0xcb   :  { %v2104_v55 = vpop.permute.xlu1 %164  ;;  %v2106_v56 = vpop.permute.xlu0 %160 }
  0xcc   :  { %2869 = vst [vmem:[#allocation20_spill] sm:$0xff] %v2104_v55  ;;  %2870 = vst [vmem:[#allocation21_spill] sm:$0xff] %v2106_v56 }
  0xcd   :  { %349 = vbcast.lane.b32.xlu1 %v1980_v13, 328  ;;  %219 = vbcast.lane.b32.xlu0 %v1968_v9, 336 }
  0xcf   :  { %v2116_v60 = vpop.permute.xlu1 %172  ;;  %v2118_v61 = vpop.permute.xlu0 %168 }
  0xd0   :  { %2871 = vst [vmem:[#allocation22_spill] sm:$0xff] %v2116_v60  ;;  %2872 = vst [vmem:[#allocation23_spill] sm:$0xff] %v2118_v61  ;;  %v623_v60 = vcombine.high %v2127_v5, %v2127_v5 }
  0xd1   :  { %286 = vbcast.lane.b32.xlu1 %v1974_v11, 336  ;;  %479 = vbcast.lane.b32.xlu0 %v1996_v17, 320 }
  0xd3   :  { %v184_v1 = vpop.permute.xlu1 %183  ;;  %v180_v3 = vpop.permute.xlu0 %179 }
  0xd4   :  { %vm699_vm1 = vcmp.ge.f32.partialorder %v184_v1, %v2121_v63  ;;  %vm698_vm2 = vcmp.ge.f32.partialorder %v180_v3, %v2121_v63 }
  0xd5   :  { %v1752_v8 = vsel %vm699_vm1, 1.0, %v2856_v7  ;;  %v1751_v10 = vsel %vm698_vm2, 1.0, %v2856_v7  ;;  %546 = vbcast.lane.b32.xlu1 %v2004_v19, 320  ;;  %416 = vbcast.lane.b32.xlu0 %v1988_v15, 328 }
  0xd6   :  { %v1251_v12 = vmul.f32 %v1752_v8, %v184_v1  ;;  %v1092_v14 = vadd.f32 %v1752_v8, %v1751_v10  ;;  %v1250_v16 = vmul.f32 %v1751_v10, %v180_v3 }
  0xd7   :  { %v251_v18 = vpop.permute.xlu1 %250  ;;  %v247_v40 = vpop.permute.xlu0 %246 }
  0xd8   :  { %v1388_v44 = vadd.f32 %v1251_v12, %v1250_v16  ;;  %vm715_vm3 = vcmp.ge.f32.partialorder %v251_v18, %v2132_v6  ;;  %vm714_vm4 = vcmp.ge.f32.partialorder %v247_v40, %v2132_v6  ;;  %v2150_v12 = vrot.slane %v593_v50, %v583_v47 }
  0xd9   :  { %v1768_v54 = vsel %vm715_vm3, 1.0, %v2856_v7  ;;  %v1767_v57 = vsel %vm714_vm4, 1.0, %v2856_v7  ;;  %353 = vbcast.lane.b32.xlu1 %v1980_v13, 336  ;;  %223 = vbcast.lane.b32.xlu0 %v1968_v9, 344 }
  0xda   :  { %v1267_v58 = vmul.f32 %v1768_v54, %v251_v18  ;;  %v1113_v0 = vadd.f32 %v1768_v54, %v1767_v57  ;;  %v1266_v1 = vmul.f32 %v1767_v57, %v247_v40  ;;  %v2160_v47 = vrot.slane %v2150_v12, %v1958_v2 }
  0xdb   :  { %v314_v3 = vpop.permute.xlu1 %313  ;;  %v188_v8 = vpop.permute.xlu0 %187 }
  0xdc   :  { %v1409_v10 = vadd.f32 %v1267_v58, %v1266_v1  ;;  %vm730_vm5 = vcmp.ge.f32.partialorder %v314_v3, %v2140_v41  ;;  %vm700_vm6 = vcmp.ge.f32.partialorder %v188_v8, %v2121_v63 }
  0xdd   :  { %v1783_v62 = vsel %vm730_vm5, 1.0, %v2856_v7  ;;  %v1753_v16 = vsel %vm700_vm6, 1.0, %v2856_v7  ;;  %290 = vbcast.lane.b32.xlu1 %v1974_v11, 344  ;;  %483 = vbcast.lane.b32.xlu0 %v1996_v17, 328 }
  0xde   :  { %v1282_v18 = vmul.f32 %v1783_v62, %v314_v3  ;;  %v1093_v54 = vadd.f32 %v1753_v16, %v1092_v14  ;;  %v1252_v40 = vmul.f32 %v1753_v16, %v188_v8 }
  0xdf   :  { %v255_v57 = vpop.permute.xlu1 %254  ;;  %v318_v4 = vpop.permute.xlu0 %317 }
  0xe0   :  { %v1389_v58 = vadd.f32 %v1388_v44, %v1252_v40  ;;  %vm716_vm7 = vcmp.ge.f32.partialorder %v255_v57, %v2132_v6  ;;  %vm731_vm8 = vcmp.ge.f32.partialorder %v318_v4, %v2140_v41 }
  0xe1   :  { %v1769_v50 = vsel %vm716_vm7, 1.0, %v2856_v7  ;;  %v1784_v1 = vsel %vm731_vm8, 1.0, %v2856_v7  ;;  %550 = vbcast.lane.b32.xlu1 %v2004_v19, 328  ;;  %420 = vbcast.lane.b32.xlu0 %v1988_v15, 336 }
  0xe2   :  { %v2166_v14 = vadd.f32 %v1769_v50, %v1113_v0  ;;  %v1268_v3 = vmul.f32 %v1769_v50, %v255_v57  ;;  %v1134_v44 = vadd.f32 %v1784_v1, %v1783_v62  ;;  %v1283_v8 = vmul.f32 %v1784_v1, %v318_v4 }
  0xe3   :  { %v385_v16 = vpop.permute.xlu1 %384  ;;  %v381_v40 = vpop.permute.xlu0 %380  ;;  %v2180_v4 = vrot.slane %v2102_v53, %v1958_v2  ;;  %v2185_v1 = vrot.slane %v623_v60, %v1958_v2  ;;  %v625_v53 = vcombine.high %v2150_v12, %v2150_v12 }
  0xe4   :  { %v2170_v61 = vadd.f32 %v1409_v10, %v1268_v3  ;;  %v1430_v35 = vadd.f32 %v1283_v8, %v1282_v18  ;;  %vm747_vm9 = vcmp.ge.f32.partialorder %v385_v16, %v2160_v47  ;;  %vm746_vm10 = vcmp.ge.f32.partialorder %v381_v40, %v2160_v47 }
  0xe5   :  { %v1800_v34 = vsel %vm747_vm9, 1.0, %v2856_v7  ;;  %v1799_v0 = vsel %vm746_vm10, 1.0, %v2856_v7  ;;  %357 = vbcast.lane.b32.xlu1 %v1980_v13, 344  ;;  %227 = vbcast.lane.b32.xlu0 %v1968_v9, 352  ;;  %vm667_vm11 = vcmp.ge.f32.partialorder %v2024_v23, %v2180_v4  ;;  %vm668_vm13 = vcmp.ge.f32.partialorder %v2016_v20, %v2180_v4 }
  0xe6   :  { %v1299_v5 = vmul.f32 %v1800_v34, %v385_v16  ;;  %v1155_v10 = vadd.f32 %v1800_v34, %v1799_v0  ;;  %v1298_v62 = vmul.f32 %v1799_v0, %v381_v40  ;;  %vm666_vm14 = vcmp.ge.f32.partialorder %v2018_v21, %v2180_v4 }
  0xe7   :  { %v322_v18 = vpop.permute.xlu1 %321  ;;  %v192_v57 = vpop.permute.xlu0 %191  ;;  %v1720_v60 = vsel %vm667_vm11, 1.0, %v2856_v7  ;;  %v1721_v48 = vsel %vm668_vm13, 1.0, %v2856_v7  ;;  %vm669_vm4 = vcmp.ge.f32.partialorder %v2022_v22, %v2180_v4  ;;  %vm671_vm7 = vcmp.ge.f32.partialorder %v2028_v24, %v2180_v4 }
  0xe8   :  { %v1451_v50 = vadd.f32 %v1299_v5, %v1298_v62  ;;  %vm732_vm12 = vcmp.ge.f32.partialorder %v322_v18, %v2140_v41  ;;  %vm701_vm15 = vcmp.ge.f32.partialorder %v192_v57, %v2121_v63  ;;  %v1719_v62 = vsel %vm666_vm14, 1.0, %v2856_v7 }
  0xe9   :  { %294 = vbcast.lane.b32.xlu1 %v1974_v11, 352  ;;  %487 = vbcast.lane.b32.xlu0 %v1996_v17, 336  ;;  %v1785_v34 = vsel %vm732_vm12, 1.0, %v2856_v7  ;;  %v1754_v16 = vsel %vm701_vm15, 1.0, %v2856_v7  ;;  %v1219_v51 = vmul.f32 %v1720_v60, %v2024_v23  ;;  %vm670_vm8 = vcmp.ge.f32.partialorder %v2030_v25, %v2180_v4 }
  0xea   :  { %v2199_v3 = vadd.f32 %v1785_v34, %v1134_v44  ;;  %v1284_v8 = vmul.f32 %v1785_v34, %v322_v18  ;;  %v2202_v12 = vadd.f32 %v1754_v16, %v1093_v54  ;;  %v1253_v5 = vmul.f32 %v1754_v16, %v192_v57 }
  0xeb   :  { %v452_v40 = vpop.permute.xlu1 %451  ;;  %v448_v0 = vpop.permute.xlu0 %447  ;;  %v1050_v16 = vadd.f32 %v1720_v60, %v1719_v62  ;;  %vm672_vm11 = vcmp.ge.f32.partialorder %v2036_v27, %v2180_v4  ;;  %vm673_vm14 = vcmp.ge.f32.partialorder %v2034_v26, %v2180_v4 }
  0xec   :  { %vm763_vm0 = vcmp.ge.f32.partialorder %v452_v40, %v2185_v1  ;;  %vm762_vm1 = vcmp.ge.f32.partialorder %v448_v0, %v2185_v1  ;;  %v2207_v55 = vadd.f32 %v1430_v35, %v1284_v8  ;;  %v2213_v18 = vadd.f32 %v1389_v58, %v1253_v5 }
  0xed   :  { %v1816_v56 = vsel %vm763_vm0, 1.0, %v2856_v7  ;;  %v1815_v44 = vsel %vm762_vm1, 1.0, %v2856_v7  ;;  %554 = vbcast.lane.b32.xlu1 %v2004_v19, 336  ;;  %424 = vbcast.lane.b32.xlu0 %v1988_v15, 344  ;;  %v2219_v8 = vrot.slane %v625_v53, %v1958_v2  ;;  %v1220_v5 = vmul.f32 %v1721_v48, %v2016_v20 }
  0xee   :  { %v1315_v54 = vmul.f32 %v1816_v56, %v452_v40  ;;  %v2215_v57 = vadd.f32 %v1816_v56, %v1815_v44  ;;  %v1314_v34 = vmul.f32 %v1815_v44, %v448_v0  ;;  %v1218_v56 = vmul.f32 %v1719_v62, %v2018_v21 }
  0xef   :  { %v389_v52 = vpop.permute.xlu1 %388  ;;  %v259_v35 = vpop.permute.xlu0 %258  ;;  %v1051_v21 = vadd.f32 %v1721_v48, %v1050_v16  ;;  %vm675_vm1 = vcmp.ge.f32.partialorder %v2040_v28, %v2180_v4 }
  0xf0   :  { %v2225_v49 = vadd.f32 %v1315_v54, %v1314_v34  ;;  %vm748_vm2 = vcmp.ge.f32.partialorder %v389_v52, %v2160_v47  ;;  %vm717_vm3 = vcmp.ge.f32.partialorder %v259_v35, %v2132_v6  ;;  %v1346_v62 = vadd.f32 %v1219_v51, %v1218_v56 }
  0xf1   :  { %v1801_v23 = vsel %vm748_vm2, 1.0, %v2856_v7  ;;  %v1770_v58 = vsel %vm717_vm3, 1.0, %v2856_v7  ;;  %361 = vbcast.lane.b32.xlu1 %v1980_v13, 352  ;;  %231 = vbcast.lane.b32.xlu0 %v1968_v9, 360  ;;  %vm674_vm2 = vcmp.ge.f32.partialorder %v2042_v29, %v2180_v4 }
  0xf2   :  { %v2236_v53 = vadd.f32 %v1801_v23, %v1155_v10  ;;  %v1300_v60 = vmul.f32 %v1801_v23, %v389_v52  ;;  %v1115_v40 = vadd.f32 %v1770_v58, %v2166_v14  ;;  %v1269_v0 = vmul.f32 %v1770_v58, %v259_v35 }
  0xf3   :  { %v519_v44 = vpop.permute.xlu1 %518  ;;  %v515_v54 = vpop.permute.xlu0 %514  ;;  %v2873_v10 = vmov 0.0  }
  0xf4   :  { %v2240_v34 = vadd.f32 %v1451_v50, %v1300_v60  ;;  %v1411_v7 = vadd.f32 %v2170_v61, %v1269_v0  ;;  %vm779_vm5 = vcmp.ge.f32.partialorder %v519_v44, %v2219_v8  ;;  %vm778_vm6 = vcmp.ge.f32.partialorder %v515_v54, %v2219_v8 }
  0xf5   :  { %v1722_v52 = vsel %vm669_vm4, 1.0, %v2873_v10  ;;  %v1832_v20 = vsel %vm779_vm5, 1.0, %v2873_v10  ;;  %v1831_v48 = vsel %vm778_vm6, 1.0, %v2873_v10  ;;  %298 = vbcast.lane.b32.xlu1 %v1974_v11, 360  ;;  %491 = vbcast.lane.b32.xlu0 %v1996_v17, 344  ;;  %v1347_v50 = vadd.f32 %v1346_v62, %v1220_v5 }
  0xf6   :  { %v1331_v51 = vmul.f32 %v1832_v20, %v519_v44  ;;  %v1197_v61 = vadd.f32 %v1832_v20, %v1831_v48  ;;  %v1330_v14 = vmul.f32 %v1831_v48, %v515_v54  ;;  %v1052_v16 = vadd.f32 %v1722_v52, %v1051_v21 }
  0xf7   :  { %v326_v35 = vpop.permute.xlu1 %325  ;;  %v196_v56 = vpop.permute.xlu0 %195  ;;  %v1221_v23 = vmul.f32 %v1722_v52, %v2022_v22  ;;  %v1724_v60 = vsel %vm671_vm7, 1.0, %v2873_v10  ;;  %v1723_v0 = vsel %vm670_vm8, 1.0, %v2873_v10  ;;  %v2275_v48 = vrot.slane %v2114_v59, %v1958_v2 }
  0xf8   :  { %v1493_v58 = vadd.f32 %v1331_v51, %v1330_v14  ;;  %vm733_vm9 = vcmp.ge.f32.partialorder %v326_v35, %v2140_v41  ;;  %vm702_vm10 = vcmp.ge.f32.partialorder %v196_v56, %v2121_v63  ;;  %v1053_v20 = vadd.f32 %v1723_v0, %v1052_v16 }
  0xf9   :  { %v1786_v44 = vsel %vm733_vm9, 1.0, %v2873_v10  ;;  %v1755_v5 = vsel %vm702_vm10, 1.0, %v2873_v10  ;;  %558 = vbcast.lane.b32.xlu1 %v2004_v19, 344  ;;  %428 = vbcast.lane.b32.xlu0 %v1988_v15, 352  ;;  %v1348_v52 = vadd.f32 %v1347_v50, %v1221_v23  ;;  %vm677_vm5 = vcmp.ge.f32.partialorder %v2046_v30, %v2180_v4 }
  0xfa   :  { %v1136_v22 = vadd.f32 %v1786_v44, %v2199_v3  ;;  %v1285_v21 = vmul.f32 %v1786_v44, %v326_v35  ;;  %v1095_v62 = vadd.f32 %v1755_v5, %v2202_v12  ;;  %v1254_v54 = vmul.f32 %v1755_v5, %v196_v56 }
  0xfb   :  { %v263_v51 = vpop.permute.xlu1 %262  ;;  %v456_v14 = vpop.permute.xlu0 %455  ;;  %v1223_v3 = vmul.f32 %v1724_v60, %v2028_v24  ;;  %v1222_v12 = vmul.f32 %v1723_v0, %v2030_v25  ;;  %v1054_v24 = vadd.f32 %v1724_v60, %v1053_v20  ;;  %v1725_v25 = vsel %vm672_vm11, 1.0, %v2873_v10 }
  0xfc   :  { %v1432_v45 = vadd.f32 %v2207_v55, %v1285_v21  ;;  %v1391_v46 = vadd.f32 %v2213_v18, %v1254_v54  ;;  %vm718_vm12 = vcmp.ge.f32.partialorder %v263_v51, %v2132_v6  ;;  %vm764_vm13 = vcmp.ge.f32.partialorder %v456_v14, %v2185_v1 }
  0xfd   :  { %v1771_v50 = vsel %vm718_vm12, 1.0, %v2873_v10  ;;  %v1817_v16 = vsel %vm764_vm13, 1.0, %v2873_v10  ;;  %365 = vbcast.lane.b32.xlu1 %v1980_v13, 360  ;;  %235 = vbcast.lane.b32.xlu0 %v1968_v9, 368  ;;  %v1349_v35 = vadd.f32 %v1348_v52, %v1222_v12  ;;  %v1726_v21 = vsel %vm673_vm14, 1.0, %v2873_v10 }
  0xfe   :  { %v1116_v2 = vadd.f32 %v1771_v50, %v1115_v40  ;;  %v1270_v55 = vmul.f32 %v1771_v50, %v263_v51  ;;  %v1177_v59 = vadd.f32 %v1817_v16, %v2215_v57  ;;  %v1316_v18 = vmul.f32 %v1817_v16, %v456_v14 }
  0xff   :  { %v523_v56 = vpop.permute.xlu1 %522  ;;  %v393_v23 = vpop.permute.xlu0 %392  ;;  %v1350_v54 = vadd.f32 %v1349_v35, %v1223_v3  ;;  %v1055_v52 = vadd.f32 %v1725_v25, %v1054_v24  ;;  %v1224_v20 = vmul.f32 %v1725_v25, %v2036_v27  ;;  %v1727_v27 = vsel %vm674_vm2, 1.0, %v2873_v10 }
 0x100   :  { %v1412_v0 = vadd.f32 %v1411_v7, %v1270_v55  ;;  %v1473_v44 = vadd.f32 %v2225_v49, %v1316_v18  ;;  %vm780_vm15 = vcmp.ge.f32.partialorder %v523_v56, %v2219_v8  ;;  %vm749_vm0 = vcmp.ge.f32.partialorder %v393_v23, %v2160_v47 }
 0x101   :  { %v1833_v57 = vsel %vm780_vm15, 1.0, %v2873_v10  ;;  %v1802_v40 = vsel %vm749_vm0, 1.0, %v2873_v10  ;;  %302 = vbcast.lane.b32.xlu1 %v1974_v11, 368  ;;  %495 = vbcast.lane.b32.xlu0 %v1996_v17, 352  ;;  %v1225_v18 = vmul.f32 %v1726_v21, %v2034_v26  ;;  %v1351_v35 = vadd.f32 %v1350_v54, %v1224_v20 }
 0x102   :  { %v1198_v7 = vadd.f32 %v1833_v57, %v1197_v61  ;;  %v1332_v49 = vmul.f32 %v1833_v57, %v523_v56  ;;  %v1157_v60 = vadd.f32 %v1802_v40, %v2236_v53  ;;  %v1301_v5 = vmul.f32 %v1802_v40, %v393_v23 }
 0x103   :  { %v330_v51 = vpop.permute.xlu1 %329  ;;  %v200_v14 = vpop.permute.xlu0 %199  ;;  %v2318_v53 = vsel %vm675_vm1, 1.0, %v2873_v10  ;;  %v1056_v24 = vadd.f32 %v1726_v21, %v1055_v52  ;;  %v1352_v21 = vadd.f32 %v1351_v35, %v1225_v18  ;;  %vm676_vm8 = vcmp.ge.f32.partialorder %v2048_v31, %v2180_v4 }
 0x104   :  { %v1494_v12 = vadd.f32 %v1493_v58, %v1332_v49  ;;  %v1453_v50 = vadd.f32 %v2240_v34, %v1301_v5  ;;  %vm734_vm3 = vcmp.ge.f32.partialorder %v330_v51, %v2140_v41  ;;  %vm703_vm4 = vcmp.ge.f32.partialorder %v200_v14, %v2121_v63 }
 0x105   :  { %v1787_v61 = vsel %vm734_vm3, 1.0, %v2873_v10  ;;  %v1756_v58 = vsel %vm703_vm4, 1.0, %v2873_v10  ;;  %562 = vbcast.lane.b32.xlu1 %v2004_v19, 352  ;;  %432 = vbcast.lane.b32.xlu0 %v1988_v15, 360  ;;  %v1057_v54 = vadd.f32 %v1727_v27, %v1056_v24  ;;  %vm683_vm11 = vcmp.ge.f32.partialorder %v2064_v36, %v2275_v48 }
 0x106   :  { %v1137_v34 = vadd.f32 %v1787_v61, %v1136_v22  ;;  %v1286_v3 = vmul.f32 %v1787_v61, %v330_v51  ;;  %v1096_v16 = vadd.f32 %v1756_v58, %v1095_v62  ;;  %v1255_v55 = vmul.f32 %v1756_v58, %v200_v14 }
 0x107   :  { %v267_v25 = vpop.permute.xlu1 %266  ;;  %v460_v56 = vpop.permute.xlu0 %459  ;;  %v1227_v22 = vmul.f32 %v2318_v53, %v2040_v28  ;;  %v1226_v62 = vmul.f32 %v1727_v27, %v2042_v29  ;;  %v2344_v28 = vsel %vm677_vm5, 1.0, %v2873_v10  ;;  %vm682_vm12 = vcmp.ge.f32.partialorder %v2066_v37, %v2275_v48 }
 0x108   :  { %v1433_v23 = vadd.f32 %v1432_v45, %v1286_v3  ;;  %v1392_v57 = vadd.f32 %v1391_v46, %v1255_v55  ;;  %vm719_vm6 = vcmp.ge.f32.partialorder %v267_v25, %v2132_v6  ;;  %vm765_vm7 = vcmp.ge.f32.partialorder %v460_v56, %v2185_v1 }
 0x109   :  { %v1772_v26 = vsel %vm719_vm6, 1.0, %v2873_v10  ;;  %v1818_v40 = vsel %vm765_vm7, 1.0, %v2873_v10  ;;  %369 = vbcast.lane.b32.xlu1 %v1980_v13, 368  ;;  %239 = vbcast.lane.b32.xlu0 %v1968_v9, 376  ;;  %v1353_v27 = vadd.f32 %v1352_v21, %v1226_v62  ;;  %v2360_v61 = vmul.f32 %v2344_v28, %v2046_v30 }
 0x10a   :  { %v1117_v49 = vadd.f32 %v1772_v26, %v1116_v2  ;;  %v1271_v45 = vmul.f32 %v1772_v26, %v267_v25  ;;  %v1178_v46 = vadd.f32 %v1818_v40, %v1177_v59  ;;  %v1317_v5 = vmul.f32 %v1818_v40, %v460_v56 }
 0x10b   :  { %v527_v29 = vpop.permute.xlu1 %526  ;;  %v397_v52 = vpop.permute.xlu0 %396  ;;  %v1729_v58 = vsel %vm676_vm8, 1.0, %v2873_v10  ;;  %vm684_vm13 = vcmp.ge.f32.partialorder %v2072_v39, %v2275_v48  ;;  %v1736_v30 = vsel %vm683_vm11, 1.0, %v2873_v10  ;;  %v1058_v56 = vadd.f32 %v2318_v53, %v1057_v54 }
 0x10c   :  { %v1413_v20 = vadd.f32 %v1412_v0, %v1271_v45  ;;  %v1474_v51 = vadd.f32 %v1473_v44, %v1317_v5  ;;  %vm781_vm9 = vcmp.ge.f32.partialorder %v527_v29, %v2219_v8  ;;  %vm750_vm10 = vcmp.ge.f32.partialorder %v397_v52, %v2160_v47 }
 0x10d   :  { %v1834_v9 = vsel %vm781_vm9, 1.0, %v2873_v10  ;;  %v1803_v2 = vsel %vm750_vm10, 1.0, %v2873_v10  ;;  %306 = vbcast.lane.b32.xlu1 %v1974_v11, 376  ;;  %499 = vbcast.lane.b32.xlu0 %v1996_v17, 360  ;;  %v2383_v62 = vadd.f32 %v1353_v27, %v1227_v22  ;;  %v2386_v26 = vmul.f32 %v1729_v58, %v2048_v31 }
 0x10e   :  { %v1199_v59 = vadd.f32 %v1834_v9, %v1198_v7  ;;  %v1333_v0 = vmul.f32 %v1834_v9, %v527_v29  ;;  %v1158_v44 = vadd.f32 %v1803_v2, %v1157_v60  ;;  %v1302_v14 = vmul.f32 %v1803_v2, %v397_v52 }
 0x10f   :  { %v334_v11 = vpop.permute.xlu1 %333  ;;  %v204_v3 = vpop.permute.xlu0 %203  ;;  %v1735_v60 = vsel %vm682_vm12, 1.0, %v2873_v10  ;;  %v1737_v40 = vsel %vm684_vm13, 1.0, %v2873_v10  ;;  %vm685_vm2 = vcmp.ge.f32.partialorder %v2070_v38, %v2275_v48  ;;  %v2400_v54 = vadd.f32 %v1729_v58, %v1058_v56 }
 0x110   :  { %v1495_v55 = vadd.f32 %v1494_v12, %v1333_v0  ;;  %v1454_v7 = vadd.f32 %v1453_v50, %v1302_v14  ;;  %vm735_vm14 = vcmp.ge.f32.partialorder %v334_v11, %v2140_v41  ;;  %vm704_vm15 = vcmp.ge.f32.partialorder %v204_v3, %v2121_v63 }
 0x111   :  { %v1788_v18 = vsel %vm735_vm14, 1.0, %v2873_v10  ;;  %v1757_v35 = vsel %vm704_vm15, 1.0, %v2873_v10  ;;  %566 = vbcast.lane.b32.xlu1 %v2004_v19, 360  ;;  %436 = vbcast.lane.b32.xlu0 %v1988_v15, 368  ;;  %v1235_v52 = vmul.f32 %v1736_v30, %v2064_v36  ;;  %vm686_vm3 = vcmp.ge.f32.partialorder %v2078_v43, %v2275_v48 }
 0x112   :  { %v1138_v12 = vadd.f32 %v1788_v18, %v1137_v34  ;;  %v1287_v50 = vmul.f32 %v1788_v18, %v334_v11  ;;  %v1097_v24 = vadd.f32 %v1757_v35, %v1096_v16  ;;  %v1256_v25 = vmul.f32 %v1757_v35, %v204_v3 }
 0x113   :  { %v271_v45 = vpop.permute.xlu1 %270  ;;  %v464_v5 = vpop.permute.xlu0 %463  ;;  %v1071_v34 = vadd.f32 %v1736_v30, %v1735_v60  ;;  %vm679_vm6 = vcmp.ge.f32.partialorder %v2052_v32, %v2180_v4  ;;  %v1739_v30 = vsel %vm686_vm3, 1.0, %v2873_v10  ;;  %vm687_vm9 = vcmp.ge.f32.partialorder %v2076_v42, %v2275_v48 }
 0x114   :  { %v1434_v21 = vadd.f32 %v1433_v23, %v1287_v50  ;;  %v1393_v29 = vadd.f32 %v1392_v57, %v1256_v25  ;;  %vm720_vm0 = vcmp.ge.f32.partialorder %v271_v45, %v2132_v6  ;;  %vm766_vm1 = vcmp.ge.f32.partialorder %v464_v5, %v2185_v1 }
 0x115   :  { %v1773_v31 = vsel %vm720_vm0, 1.0, %v2873_v10  ;;  %v1819_v53 = vsel %vm766_vm1, 1.0, %v2873_v10  ;;  %503 = vbcast.lane.b32.xlu1 %v1996_v17, 368  ;;  %373 = vbcast.lane.b32.xlu0 %v1980_v13, 376  ;;  %v1072_v9 = vadd.f32 %v1737_v40, %v1071_v34  ;;  %v1234_v13 = vmul.f32 %v1735_v60, %v2066_v37 }
 0x116   :  { %v1118_v16 = vadd.f32 %v1773_v31, %v1117_v49  ;;  %v1272_v22 = vmul.f32 %v1773_v31, %v271_v45  ;;  %v1179_v23 = vadd.f32 %v1819_v53, %v1178_v46  ;;  %v1318_v57 = vmul.f32 %v1819_v53, %v464_v5  ;;  %v2874_v45 = vld [vmem:[#allocation15_spill] sm:$0xff] }
 0x117   :  { %v531_v2 = vpop.permute.xlu1 %530  ;;  %v401_v0 = vpop.permute.xlu0 %400  ;;  %v1738_v49 = vsel %vm685_vm2, 1.0, %v2873_v10  ;;  %v1236_v37 = vmul.f32 %v1737_v40, %v2072_v39  ;;  %vm678_vm10 = vcmp.ge.f32.partialorder %v2054_v33, %v2180_v4  ;;  %vm688_vm11 = vcmp.ge.f32.partialorder %v2874_v45, %v2275_v48 }
 0x118   :  { %v1414_v14 = vadd.f32 %v1413_v20, %v1272_v22  ;;  %v1475_v27 = vadd.f32 %v1474_v51, %v1318_v57  ;;  %vm782_vm4 = vcmp.ge.f32.partialorder %v531_v2, %v2219_v8  ;;  %vm751_vm5 = vcmp.ge.f32.partialorder %v401_v0, %v2160_v47 }
 0x119   :  { %v1835_v36 = vsel %vm782_vm4, 1.0, %v2873_v10  ;;  %v1804_v46 = vsel %vm751_vm5, 1.0, %v2873_v10  ;;  %570 = vbcast.lane.b32.xlu1 %v2004_v19, 368  ;;  %440 = vbcast.lane.b32.xlu0 %v1988_v15, 376  ;;  %v1073_v3 = vadd.f32 %v1738_v49, %v1072_v9  ;;  %v1367_v15 = vadd.f32 %v1235_v52, %v1234_v13 }
 0x11a   :  { %v1200_v20 = vadd.f32 %v1835_v36, %v1199_v59  ;;  %v1334_v51 = vmul.f32 %v1835_v36, %v531_v2  ;;  %v1159_v58 = vadd.f32 %v1804_v46, %v1158_v44  ;;  %v1303_v11 = vmul.f32 %v1804_v46, %v401_v0  ;;  %v2875_v36 = vld [vmem:[#allocation14_spill] sm:$0xff] }
 0x11b   :  { %v338_v60 = vpop.permute.xlu1 %337  ;;  %v208_v18 = vpop.permute.xlu0 %207  ;;  %v1368_v56 = vadd.f32 %v1367_v15, %v1236_v37  ;;  %v1074_v40 = vadd.f32 %v1739_v30, %v1073_v3  ;;  %v1741_v2 = vsel %vm688_vm11, 1.0, %v2873_v10  ;;  %vm689_vm0 = vcmp.ge.f32.partialorder %v2875_v36, %v2275_v48 }
 0x11c   :  { %v1496_v35 = vadd.f32 %v1495_v55, %v1334_v51  ;;  %v1455_v50 = vadd.f32 %v1454_v7, %v1303_v11  ;;  %vm736_vm7 = vcmp.ge.f32.partialorder %v338_v60, %v2140_v41  ;;  %vm705_vm8 = vcmp.ge.f32.partialorder %v208_v18, %v2121_v63 }
 0x11d   :  { %v1789_v39 = vsel %vm736_vm7, 1.0, %v2873_v10  ;;  %v1758_v59 = vsel %vm705_vm8, 1.0, %v2873_v10  ;;  %574 = vbcast.lane.b32.xlu1 %v2004_v19, 376  ;;  %507 = vbcast.lane.b32.xlu0 %v1996_v17, 376  ;;  %v1237_v17 = vmul.f32 %v1738_v49, %v2070_v38  ;;  %v1740_v19 = vsel %vm687_vm9, 1.0, %v2873_v10 }
 0x11e   :  { %v1139_v44 = vadd.f32 %v1789_v39, %v1138_v12  ;;  %v1288_v25 = vmul.f32 %v1789_v39, %v338_v60  ;;  %v1098_v55 = vadd.f32 %v1758_v59, %v1097_v24  ;;  %v1257_v7 = vmul.f32 %v1758_v59, %v208_v18 }
 0x11f   :  { %v275_v5 = vpop.permute.xlu1 %274  ;;  %v468_v34 = vpop.permute.xlu0 %467  ;;  %v1369_v38 = vadd.f32 %v1368_v56, %v1237_v17  ;;  %v1075_v9 = vadd.f32 %v1740_v19, %v1074_v40 }
 0x120   :  { %v1435_v31 = vadd.f32 %v1434_v21, %v1288_v25  ;;  %v1394_v53 = vadd.f32 %v1393_v29, %v1257_v7  ;;  %vm721_vm12 = vcmp.ge.f32.partialorder %v275_v5, %v2132_v6  ;;  %vm767_vm13 = vcmp.ge.f32.partialorder %v468_v34, %v2185_v1 }
 0x121   :  { %v1774_v12 = vsel %vm721_vm12, 1.0, %v2873_v10  ;;  %v1820_v24 = vsel %vm767_vm13, 1.0, %v2873_v10  ;;  %v2448_v29 = vsel %vm679_vm6, 1.0, %v2873_v10 }
 0x122   :  { %v1119_v22 = vadd.f32 %v1774_v12, %v1118_v16  ;;  %v1273_v57 = vmul.f32 %v1774_v12, %v275_v5  ;;  %v1180_v52 = vadd.f32 %v1820_v24, %v1179_v23  ;;  %v1319_v21 = vmul.f32 %v1820_v24, %v468_v34 }
 0x123   :  { %v535_v0 = vpop.permute.xlu1 %534  ;;  %v405_v13 = vpop.permute.xlu0 %404  ;;  %v1238_v23 = vmul.f32 %v1739_v30, %v2078_v43  ;;  %v2469_v43 = vsel %vm678_vm10, 1.0, %v2873_v10  ;;  %v2876_v30 = vld [vmem:[#allocation17_spill] sm:$0xff] }
 0x124   :  { %v1415_v49 = vadd.f32 %v1414_v14, %v1273_v57  ;;  %v1476_v16 = vadd.f32 %v1475_v27, %v1319_v21  ;;  %vm783_vm14 = vcmp.ge.f32.partialorder %v535_v0, %v2219_v8  ;;  %vm752_vm15 = vcmp.ge.f32.partialorder %v405_v13, %v2160_v47 }
 0x125   :  { %v1836_v46 = vsel %vm783_vm14, 1.0, %v2873_v10  ;;  %v1805_v51 = vsel %vm752_vm15, 1.0, %v2873_v10  ;;  %v2463_v14 = vadd.f32 %v2383_v62, %v2386_v26  ;;  %v1076_v27 = vadd.f32 %v1741_v2, %v1075_v9 }
 0x126   :  { %v1201_v11 = vadd.f32 %v1836_v46, %v1200_v20  ;;  %v1335_v37 = vmul.f32 %v1836_v46, %v535_v0  ;;  %v1160_v3 = vadd.f32 %v1805_v51, %v1159_v58  ;;  %v1304_v60 = vmul.f32 %v1805_v51, %v405_v13  ;;  %v2878_v0 = vld [vmem:[#allocation19_spill] sm:$0xff] }
 0x127   :  { %vm690_vm1 = vcmp.ge.f32.partialorder %v2876_v30, %v2275_v48  ;;  %v342_v18 = vpop.permute.xlu1 %341  ;;  %v212_v15 = vpop.permute.xlu0 %211  ;;  %v1370_v62 = vadd.f32 %v1369_v38, %v1238_v23  ;;  %v1742_v26 = vsel %vm689_vm0, 1.0, %v2873_v10  ;;  %vm692_vm7 = vcmp.ge.f32.partialorder %v2878_v0, %v2275_v48 }
 0x128   :  { %v1497_v20 = vadd.f32 %v1496_v35, %v1335_v37  ;;  %v1456_v39 = vadd.f32 %v1455_v50, %v1304_v60  ;;  %vm737_vm2 = vcmp.ge.f32.partialorder %v342_v18, %v2140_v41  ;;  %vm706_vm3 = vcmp.ge.f32.partialorder %v212_v15, %v2121_v63 }
 0x129   :  { %v1790_v58 = vsel %vm737_vm2, 1.0, %v2873_v10  ;;  %v1759_v59 = vsel %vm706_vm3, 1.0, %v2873_v10  ;;  %v1239_v35 = vmul.f32 %v1740_v19, %v2076_v42  ;;  %v1240_v50 = vmul.f32 %v1741_v2, %v2874_v45 }
 0x12a   :  { %v1140_v25 = vadd.f32 %v1790_v58, %v1139_v44  ;;  %v1289_v7 = vmul.f32 %v1790_v58, %v342_v18  ;;  %v1099_v56 = vadd.f32 %v1759_v59, %v1098_v55  ;;  %v1258_v40 = vmul.f32 %v1759_v59, %v212_v15  ;;  %v2877_v55 = vld [vmem:[#allocation16_spill] sm:$0xff] }
 0x12b   :  { %v1077_v5 = vadd.f32 %v1742_v26, %v1076_v27  ;;  %v1743_v34 = vsel %vm690_vm1, 1.0, %v2873_v10  ;;  %v279_v17 = vpop.permute.xlu1 %278  ;;  %v472_v12 = vpop.permute.xlu0 %471  ;;  %v1371_v44 = vadd.f32 %v1370_v62, %v1239_v35  ;;  %vm691_vm6 = vcmp.ge.f32.partialorder %v2877_v55, %v2275_v48 }
 0x12c   :  { %v1436_v24 = vadd.f32 %v1435_v31, %v1289_v7  ;;  %v1395_v57 = vadd.f32 %v1394_v53, %v1258_v40  ;;  %vm722_vm4 = vcmp.ge.f32.partialorder %v279_v17, %v2132_v6  ;;  %vm768_vm5 = vcmp.ge.f32.partialorder %v472_v12, %v2185_v1 }
 0x12d   :  { %v1775_v42 = vsel %vm722_vm4, 1.0, %v2873_v10  ;;  %v1821_v45 = vsel %vm768_vm5, 1.0, %v2873_v10  ;;  %v1060_v31 = vadd.f32 %v2344_v28, %v2400_v54  ;;  %v2497_v53 = vmul.f32 %v2469_v43, %v2054_v33 }
 0x12e   :  { %v1120_v19 = vadd.f32 %v1775_v42, %v1119_v22  ;;  %v1274_v21 = vmul.f32 %v1775_v42, %v279_v17  ;;  %v1181_v38 = vadd.f32 %v1821_v45, %v1180_v52  ;;  %v1320_v9 = vmul.f32 %v1821_v45, %v472_v12 }
 0x12f   :  { %v1078_v2 = vadd.f32 %v1743_v34, %v1077_v5  ;;  %v539_v13 = vpop.permute.xlu1 %538  ;;  %v409_v23 = vpop.permute.xlu0 %408  ;;  %v1372_v22 = vadd.f32 %v1371_v44, %v1240_v50  ;;  %v1744_v28 = vsel %vm691_vm6, 1.0, %v2873_v10  ;;  %v1745_v15 = vsel %vm692_vm7, 1.0, %v2873_v10 }
 0x130   :  { %v1416_v46 = vadd.f32 %v1415_v49, %v1274_v21  ;;  %v1477_v51 = vadd.f32 %v1476_v16, %v1320_v9  ;;  %vm784_vm8 = vcmp.ge.f32.partialorder %v539_v13, %v2219_v8  ;;  %vm753_vm9 = vcmp.ge.f32.partialorder %v409_v23, %v2160_v47 }
 0x131   :  { %v1837_v33 = vsel %vm784_vm8, 1.0, %v2873_v10  ;;  %v1806_v54 = vsel %vm753_vm9, 1.0, %v2873_v10  ;;  %v1241_v49 = vmul.f32 %v1742_v26, %v2875_v36  ;;  %v1242_v16 = vmul.f32 %v1743_v34, %v2876_v30  ;;  %v2880_v34 = vld [vmem:[#allocation21_spill] sm:$0xff] }
 0x132   :  { %v1202_v52 = vadd.f32 %v1837_v33, %v1201_v11  ;;  %v1336_v37 = vmul.f32 %v1837_v33, %v539_v13  ;;  %v1161_v60 = vadd.f32 %v1806_v54, %v1160_v3  ;;  %v1305_v27 = vmul.f32 %v1806_v54, %v409_v23  ;;  %v2879_v3 = vld [vmem:[#allocation18_spill] sm:$0xff] }
 0x133   :  { %v1079_v18 = vadd.f32 %v1744_v28, %v1078_v2  ;;  %v346_v62 = vpop.permute.xlu1 %345  ;;  %v216_v58 = vpop.permute.xlu0 %215  ;;  %v1373_v11 = vadd.f32 %v1372_v22, %v1241_v49  ;;  %vm693_vm12 = vcmp.ge.f32.partialorder %v2879_v3, %v2275_v48  ;;  %vm694_vm13 = vcmp.ge.f32.partialorder %v2880_v34, %v2275_v48  ;;  %v2882_v49 = vld [vmem:[#allocation12_spill] sm:$0xff] }
 0x134   :  { %v1498_v59 = vadd.f32 %v1497_v20, %v1336_v37  ;;  %v1457_v7 = vadd.f32 %v1456_v39, %v1305_v27  ;;  %vm738_vm10 = vcmp.ge.f32.partialorder %v346_v62, %v2140_v41  ;;  %vm707_vm11 = vcmp.ge.f32.partialorder %v216_v58, %v2121_v63 }
 0x135   :  { %v1791_v36 = vsel %vm738_vm10, 1.0, %v2873_v10  ;;  %v1760_v30 = vsel %vm707_vm11, 1.0, %v2873_v10  ;;  %v2523_v20 = vadd.f32 %v2463_v14, %v2360_v61  ;;  %v2526_v39 = vadd.f32 %v2469_v43, %v1060_v31 }
 0x136   :  { %v1141_v26 = vadd.f32 %v1791_v36, %v1140_v25  ;;  %v1290_v40 = vmul.f32 %v1791_v36, %v346_v62  ;;  %v1100_v35 = vadd.f32 %v1760_v30, %v1099_v56  ;;  %v1259_v50 = vmul.f32 %v1760_v30, %v216_v58 }
 0x137   :  { %v1080_v5 = vadd.f32 %v1745_v15, %v1079_v18  ;;  %v283_v17 = vpop.permute.xlu1 %282  ;;  %v476_v12 = vpop.permute.xlu0 %475  ;;  %v1374_v25 = vadd.f32 %v1373_v11, %v1242_v16  ;;  %v1746_v61 = vsel %vm693_vm12, 1.0, %v2873_v10  ;;  %v1747_v2 = vsel %vm694_vm13, 1.0, %v2873_v10  ;;  %v2884_v16 = vld [vmem:[#allocation23_spill] sm:$0xff] }
 0x138   :  { %v1437_v44 = vadd.f32 %v1436_v24, %v1290_v40  ;;  %v1396_v42 = vadd.f32 %v1395_v57, %v1259_v50  ;;  %vm723_vm14 = vcmp.ge.f32.partialorder %v283_v17, %v2132_v6  ;;  %vm769_vm15 = vcmp.ge.f32.partialorder %v476_v12, %v2185_v1 }
 0x139   :  { %v1776_v14 = vsel %vm723_vm14, 1.0, %v2873_v10  ;;  %v1822_v43 = vsel %vm769_vm15, 1.0, %v2873_v10  ;;  %v1243_v24 = vmul.f32 %v1744_v28, %v2877_v55  ;;  %v1244_v57 = vmul.f32 %v1745_v15, %v2878_v0 }
 0x13a   :  { %v1121_v56 = vadd.f32 %v1776_v14, %v1120_v19  ;;  %v1275_v45 = vmul.f32 %v1776_v14, %v283_v17  ;;  %v1182_v21 = vadd.f32 %v1822_v43, %v1181_v38  ;;  %v1321_v9 = vmul.f32 %v1822_v43, %v476_v12  ;;  %v2881_v38 = vld [vmem:[#allocation20_spill] sm:$0xff] }
 0x13b   :  { %v1081_v31 = vadd.f32 %v1746_v61, %v1080_v5  ;;  %v543_v13 = vpop.permute.xlu1 %542  ;;  %v413_v23 = vpop.permute.xlu0 %412  ;;  %v1375_v19 = vadd.f32 %v1374_v25, %v1243_v24  ;;  %vm695_vm2 = vcmp.ge.f32.partialorder %v2881_v38, %v2275_v48  ;;  %vm681_vm3 = vcmp.ge.f32.partialorder %v2882_v49, %v2180_v4 }
 0x13c   :  { %v1417_v22 = vadd.f32 %v1416_v46, %v1275_v45  ;;  %v1478_v33 = vadd.f32 %v1477_v51, %v1321_v9  ;;  %vm785_vm0 = vcmp.ge.f32.partialorder %v543_v13, %v2219_v8  ;;  %vm754_vm1 = vcmp.ge.f32.partialorder %v413_v23, %v2160_v47  ;;  %v2883_v46 = vld [vmem:[#allocation13_spill] sm:$0xff] }
 0x13d   :  { %v1838_v55 = vsel %vm785_vm0, 1.0, %v2873_v10  ;;  %v1807_v0 = vsel %vm754_vm1, 1.0, %v2873_v10  ;;  %vm680_vm4 = vcmp.ge.f32.partialorder %v2883_v46, %v2180_v4  ;;  %v1082_v51 = vadd.f32 %v1747_v2, %v1081_v31 }
 0x13e   :  { %v1203_v28 = vadd.f32 %v1838_v55, %v1202_v52  ;;  %v1337_v54 = vmul.f32 %v1838_v55, %v543_v13  ;;  %v1162_v37 = vadd.f32 %v1807_v0, %v1161_v60  ;;  %v1306_v27 = vmul.f32 %v1807_v0, %v413_v23 }
 0x13f   :  { %vm696_vm5 = vcmp.ge.f32.partialorder %v2884_v16, %v2275_v48  ;;  %v350_v18 = vpop.permute.xlu1 %349  ;;  %v220_v15 = vpop.permute.xlu0 %219  ;;  %v1376_v52 = vadd.f32 %v1375_v19, %v1244_v57  ;;  %v1748_v60 = vsel %vm695_vm2, 1.0, %v2873_v10  ;;  %v1733_v31 = vsel %vm680_vm4, 1.0, %v2873_v10 }
 0x140   :  { %v1499_v62 = vadd.f32 %v1498_v59, %v1337_v54  ;;  %v1458_v58 = vadd.f32 %v1457_v7, %v1306_v27  ;;  %vm739_vm6 = vcmp.ge.f32.partialorder %v350_v18, %v2140_v41  ;;  %vm708_vm7 = vcmp.ge.f32.partialorder %v220_v15, %v2121_v63 }
 0x141   :  { %v1792_v11 = vsel %vm739_vm6, 1.0, %v2873_v10  ;;  %v1761_v36 = vsel %vm708_vm7, 1.0, %v2873_v10  ;;  %v1245_v59 = vmul.f32 %v1746_v61, %v2879_v3  ;;  %v1246_v7 = vmul.f32 %v1747_v2, %v2880_v34 }
 0x142   :  { %v1142_v30 = vadd.f32 %v1792_v11, %v1141_v26  ;;  %v1291_v40 = vmul.f32 %v1792_v11, %v350_v18  ;;  %v1101_v50 = vadd.f32 %v1761_v36, %v1100_v35  ;;  %v1260_v5 = vmul.f32 %v1761_v36, %v220_v15  ;;  %v2885_v35 = vld [vmem:[#allocation22_spill] sm:$0xff] }
 0x143   :  { %v1083_v17 = vadd.f32 %v1748_v60, %v1082_v51  ;;  %v1749_v12 = vsel %vm696_vm5, 1.0, %v2873_v10  ;;  %v287_v25 = vpop.permute.xlu1 %286  ;;  %v480_v14 = vpop.permute.xlu0 %479  ;;  %v1377_v26 = vadd.f32 %v1376_v52, %v1245_v59  ;;  %vm697_vm10 = vcmp.ge.f32.partialorder %v2885_v35, %v2275_v48 }
 0x144   :  { %v1438_v43 = vadd.f32 %v1437_v44, %v1291_v40  ;;  %v1397_v45 = vadd.f32 %v1396_v42, %v1260_v5  ;;  %vm724_vm8 = vcmp.ge.f32.partialorder %v287_v25, %v2132_v6  ;;  %vm770_vm9 = vcmp.ge.f32.partialorder %v480_v14, %v2185_v1 }
 0x145   :  { %v1777_v3 = vsel %vm724_vm8, 1.0, %v2873_v10  ;;  %v1823_v34 = vsel %vm770_vm9, 1.0, %v2873_v10  ;;  %v2580_v44 = vsel %vm681_vm3, 1.0, %v2873_v10  ;;  %v1062_v42 = vadd.f32 %v2448_v29, %v2526_v39 }
 0x146   :  { %v1122_v61 = vadd.f32 %v1777_v3, %v1121_v56  ;;  %v1276_v9 = vmul.f32 %v1777_v3, %v287_v25  ;;  %v1183_v24 = vadd.f32 %v1823_v34, %v1182_v21  ;;  %v1322_v57 = vmul.f32 %v1823_v34, %v480_v14 }
 0x147   :  { %v1084_v2 = vadd.f32 %v1749_v12, %v1083_v17  ;;  %v547_v13 = vpop.permute.xlu1 %546  ;;  %v417_v56 = vpop.permute.xlu0 %416  ;;  %v1378_v19 = vadd.f32 %v1377_v26, %v1246_v7  ;;  %v1750_v39 = vsel %vm697_vm10, 1.0, %v2873_v10  ;;  %v1247_v18 = vmul.f32 %v1748_v60, %v2881_v38 }
 0x148   :  { %v1418_v23 = vadd.f32 %v1417_v22, %v1276_v9  ;;  %v1479_v21 = vadd.f32 %v1478_v33, %v1322_v57  ;;  %vm786_vm11 = vcmp.ge.f32.partialorder %v547_v13, %v2219_v8  ;;  %vm755_vm12 = vcmp.ge.f32.partialorder %v417_v56, %v2160_v47 }
 0x149   :  { %v1839_v55 = vsel %vm786_vm11, 1.0, %v2873_v10  ;;  %v1808_v4 = vsel %vm755_vm12, 1.0, %v2873_v10  ;;  %v1357_v22 = vadd.f32 %v2523_v20, %v2497_v53  ;;  %v1063_v33 = vadd.f32 %v1733_v31, %v1062_v42 }
 0x14a   :  { %v1204_v0 = vadd.f32 %v1839_v55, %v1203_v28  ;;  %v1338_v54 = vmul.f32 %v1839_v55, %v547_v13  ;;  %v1163_v27 = vadd.f32 %v1808_v4, %v1162_v37  ;;  %v1307_v51 = vmul.f32 %v1808_v4, %v417_v56 }
 0x14b   :  { %v1085_v15 = vadd.f32 %v1750_v39, %v1084_v2  ;;  %v354_v52 = vpop.permute.xlu1 %353  ;;  %v224_v11 = vpop.permute.xlu0 %223  ;;  %v1379_v40 = vadd.f32 %v1378_v19, %v1247_v18  ;;  %v1248_v28 = vmul.f32 %v1749_v12, %v2884_v16  ;;  %v1231_v60 = vmul.f32 %v2448_v29, %v2052_v32 }
 0x14c   :  { %v1500_v36 = vadd.f32 %v1499_v62, %v1338_v54  ;;  %v1459_v48 = vadd.f32 %v1458_v58, %v1307_v51  ;;  %vm740_vm13 = vcmp.ge.f32.partialorder %v354_v52, %v2140_v41  ;;  %vm709_vm14 = vcmp.ge.f32.partialorder %v224_v11, %v2121_v63 }
 0x14d   :  { %v1793_v37 = vsel %vm740_vm13, 1.0, %v2873_v10  ;;  %v1762_v5 = vsel %vm709_vm14, 1.0, %v2873_v10  ;;  %v1064_v62 = vadd.f32 %v2580_v44, %v1063_v33  ;;  %v1086_v58 = vrot.slane %v1085_v15, 4 }
 0x14e   :  { %v1143_v53 = vadd.f32 %v1793_v37, %v1142_v30  ;;  %v1292_v20 = vmul.f32 %v1793_v37, %v354_v52  ;;  %v1102_v59 = vadd.f32 %v1762_v5, %v1101_v50  ;;  %v1261_v38 = vmul.f32 %v1762_v5, %v224_v11 }
 0x14f   :  { %v291_v7 = vpop.permute.xlu1 %290  ;;  %v484_v17 = vpop.permute.xlu0 %483  ;;  %v1358_v16 = vadd.f32 %v1357_v22, %v1231_v60  ;;  %v1380_v12 = vadd.f32 %v1379_v40, %v1248_v28  ;;  %v1065_v34 = vrot.slane %v1064_v62, 4  ;;  %v1232_v9 = vmul.f32 %v1733_v31, %v2883_v46 }
 0x150   :  { %v1439_v25 = vadd.f32 %v1438_v43, %v1292_v20  ;;  %v1398_v14 = vadd.f32 %v1397_v45, %v1261_v38  ;;  %vm725_vm15 = vcmp.ge.f32.partialorder %v291_v7, %v2132_v6  ;;  %vm771_vm0 = vcmp.ge.f32.partialorder %v484_v17, %v2185_v1 }
 0x151   :  { %v1778_v30 = vsel %vm725_vm15, 1.0, %v2873_v10  ;;  %v1824_v50 = vsel %vm771_vm0, 1.0, %v2873_v10  ;;  %v1249_v43 = vmul.f32 %v1750_v39, %v2885_v35  ;;  %v1087_v45 = vadd.f32 %v1086_v58, %v1085_v15 }
 0x152   :  { %v1123_v26 = vadd.f32 %v1778_v30, %v1122_v61  ;;  %v1277_v3 = vmul.f32 %v1778_v30, %v291_v7  ;;  %v1184_v32 = vadd.f32 %v1824_v50, %v1183_v24  ;;  %v1323_v29 = vmul.f32 %v1824_v50, %v484_v17 }
 0x153   :  { %v551_v57 = vpop.permute.xlu1 %550  ;;  %v421_v42 = vpop.permute.xlu0 %420  ;;  %v1359_v56 = vadd.f32 %v1358_v16, %v1232_v9  ;;  %v1381_v19 = vadd.f32 %v1380_v12, %v1249_v43  ;;  %v1233_v35 = vmul.f32 %v2580_v44, %v2882_v49  ;;  %v1066_v39 = vadd.f32 %v1065_v34, %v1064_v62 }
 0x154   :  { %v1419_v2 = vadd.f32 %v1418_v23, %v1277_v3  ;;  %v1480_v13 = vadd.f32 %v1479_v21, %v1323_v29  ;;  %vm787_vm1 = vcmp.ge.f32.partialorder %v551_v57, %v2219_v8  ;;  %vm756_vm2 = vcmp.ge.f32.partialorder %v421_v42, %v2160_v47 }
 0x155   :  { %v1840_v61 = vsel %vm787_vm1, 1.0, %v2873_v10  ;;  %v1809_v24 = vsel %vm756_vm2, 1.0, %v2873_v10  ;;  %v1088_v23 = vrot.slane %v1087_v45, 2  ;;  %v1360_v33 = vadd.f32 %v1359_v56, %v1233_v35 }
 0x156   :  { %v1205_v55 = vadd.f32 %v1840_v61, %v1204_v0  ;;  %v1339_v4 = vmul.f32 %v1840_v61, %v551_v57  ;;  %v1164_v46 = vadd.f32 %v1809_v24, %v1163_v27  ;;  %v1308_v31 = vmul.f32 %v1809_v24, %v421_v42 }
 0x157   :  { %v358_v21 = vpop.permute.xlu1 %357  ;;  %v228_v54 = vpop.permute.xlu0 %227  ;;  %v1382_v18 = vrot.slane %v1381_v19, 4  ;;  %v1067_v44 = vrot.slane %v1066_v39, 2  ;;  %v1089_v40 = vadd.f32 %v1088_v23, %v1087_v45  ;;  %v1361_v5 = vrot.slane %v1360_v33, 4  ;;  %v2886_v45 = vld [vmem:[#allocation11_spill] sm:$0xff] }
 0x158   :  { %v1501_v51 = vadd.f32 %v1500_v36, %v1339_v4  ;;  %v1460_v22 = vadd.f32 %v1459_v48, %v1308_v31  ;;  %vm741_vm3 = vcmp.ge.f32.partialorder %v358_v21, %v2140_v41  ;;  %vm710_vm4 = vcmp.ge.f32.partialorder %v228_v54, %v2121_v63 }
 0x159   :  { %v1794_v0 = vsel %vm741_vm3, 1.0, %v2873_v10  ;;  %v1763_v27 = vsel %vm710_vm4, 1.0, %v2873_v10  ;;  %v1383_v20 = vadd.f32 %v1382_v18, %v1381_v19  ;;  %v1068_v7 = vadd.f32 %v1067_v44, %v1066_v39 }
 0x15a   :  { %v1144_v15 = vadd.f32 %v1794_v0, %v1143_v53  ;;  %v1293_v52 = vmul.f32 %v1794_v0, %v358_v21  ;;  %v1103_v11 = vadd.f32 %v1763_v27, %v1102_v59  ;;  %v1262_v49 = vmul.f32 %v1763_v27, %v228_v54 }
 0x15b   :  { %v295_v28 = vpop.permute.xlu1 %294  ;;  %v488_v37 = vpop.permute.xlu0 %487  ;;  %v1090_v17 = vrot.slane %v1089_v40, 1  ;;  %v1362_v30 = vadd.f32 %v1361_v5, %v1360_v33  ;;  %v1384_v50 = vrot.slane %v1383_v20, 2  ;;  %v1069_v43 = vrot.slane %v1068_v7, 1 }
 0x15c   :  { %v1440_v36 = vadd.f32 %v1439_v25, %v1293_v52  ;;  %v1399_v48 = vadd.f32 %v1398_v14, %v1262_v49  ;;  %vm726_vm5 = vcmp.ge.f32.partialorder %v295_v28, %v2132_v6  ;;  %vm772_vm6 = vcmp.ge.f32.partialorder %v488_v37, %v2185_v1 }
 0x15d   :  { %v1779_v38 = vsel %vm726_vm5, 1.0, %v2873_v10  ;;  %v1825_v60 = vsel %vm772_vm6, 1.0, %v2873_v10  ;;  %v1514_v57 = vrot.slane %v2886_v45, 1  ;;  %v1091_v42 = vadd.f32 %v1090_v17, %v1089_v40 }
 0x15e   :  { %v1124_v53 = vadd.f32 %v1779_v38, %v1123_v26  ;;  %v1278_v62 = vmul.f32 %v1779_v38, %v295_v28  ;;  %v1185_v59 = vadd.f32 %v1825_v60, %v1184_v32  ;;  %v1324_v58 = vmul.f32 %v1825_v60, %v488_v37 }
 0x15f   :  { %v555_v16 = vpop.permute.xlu1 %554  ;;  %v425_v12 = vpop.permute.xlu0 %424  ;;  %v1363_v61 = vrot.slane %v1362_v30, 2  ;;  %v1385_v24 = vadd.f32 %v1384_v50, %v1383_v20  ;;  %v1070_v23 = vadd.f32 %v1069_v43, %v1068_v7  ;;  %v1530_v21 = vmul.f32 %v1514_v57, %v1091_v42 }
 0x160   :  { %v1420_v25 = vadd.f32 %v1419_v2, %v1278_v62  ;;  %v1481_v14 = vadd.f32 %v1480_v13, %v1324_v58  ;;  %vm788_vm7 = vcmp.ge.f32.partialorder %v555_v16, %v2219_v8  ;;  %vm757_vm8 = vcmp.ge.f32.partialorder %v425_v12, %v2160_v47 }
 0x161   :  { %v1841_v3 = vsel %vm788_vm7, 1.0, %v2873_v10  ;;  %v1810_v29 = vsel %vm757_vm8, 1.0, %v2873_v10  ;;  %v1364_v18 = vadd.f32 %v1363_v61, %v1362_v30  ;;  %v1386_v0 = vrot.slane %v1385_v24, 1 }
 0x162   :  { %v1206_v26 = vadd.f32 %v1841_v3, %v1205_v55  ;;  %v1340_v34 = vmul.f32 %v1841_v3, %v555_v16  ;;  %v1165_v32 = vadd.f32 %v1810_v29, %v1164_v46  ;;  %v1309_v9 = vmul.f32 %v1810_v29, %v425_v12 }
 0x163   :  { %v362_v2 = vpop.permute.xlu1 %361  ;;  %v232_v13 = vpop.permute.xlu0 %231  ;;  %v1529_v40 = vmul.f32 %v1070_v23, %v2886_v45  ;;  %v2645_v28 = vmul.f32 %v2886_v45, %v2886_v45  ;;  %v1538_v37 = vadd.f32 1.0, %v1530_v21  ;;  %v1365_v38 = vrot.slane %v1364_v18, 1 }
 0x164   :  { %v1502_v56 = vadd.f32 %v1501_v51, %v1340_v34  ;;  %v1461_v19 = vadd.f32 %v1460_v22, %v1309_v9  ;;  %vm742_vm9 = vcmp.ge.f32.partialorder %v362_v2, %v2140_v41  ;;  %vm711_vm10 = vcmp.ge.f32.partialorder %v232_v13, %v2121_v63 }
 0x165   :  { %v1795_v4 = vsel %vm742_vm9, 1.0, %v2873_v10  ;;  %v1764_v55 = vsel %vm711_vm10, 1.0, %v2873_v10  ;;  %v1387_v60 = vadd.f32 %v1386_v0, %v1385_v24  ;;  %v1537_v16 = vadd.f32 1.0, %v1529_v40 }
 0x166   :  { %v1145_v46 = vadd.f32 %v1795_v4, %v1144_v15  ;;  %v1294_v31 = vmul.f32 %v1795_v4, %v362_v2  ;;  %v1104_v35 = vadd.f32 %v1764_v55, %v1103_v11  ;;  %v1263_v39 = vmul.f32 %v1764_v55, %v232_v13 }
 0x167   :  { %v299_v54 = vpop.permute.xlu1 %298  ;;  %v492_v51 = vpop.permute.xlu0 %491  ;;  %v1636_v12 = vrot.slane %v2645_v28, 1  ;;  %vm1546_vm15 = vcmp.gt.f32.partialorder %v1538_v37, %v1387_v60  ;;  %v1366_v3 = vadd.f32 %v1365_v38, %v1364_v18  ;;  %vm1578_vm5 = vcmask 1041409  }
 0x168   :  { %v1441_v22 = vadd.f32 %v1440_v36, %v1294_v31  ;;  %v1400_v33 = vadd.f32 %v1399_v48, %v1263_v39  ;;  %vm727_vm11 = vcmp.ge.f32.partialorder %v299_v54, %v2132_v6  ;;  %vm773_vm12 = vcmp.ge.f32.partialorder %v492_v51, %v2185_v1 }
 0x169   :  { %v1780_v27 = vsel %vm727_vm11, 1.0, %v2873_v10  ;;  %v1826_v15 = vsel %vm773_vm12, 1.0, %v2873_v10  ;;  %vm1545_vm2 = vcmp.gt.f32.partialorder %v1537_v16, %v1366_v3  ;;  %v1848_v42 = vsel %vm1546_vm15, 1.0, %v2873_v10 }
 0x16a   :  { %v1125_v52 = vadd.f32 %v1780_v27, %v1124_v53  ;;  %v1279_v11 = vmul.f32 %v1780_v27, %v299_v54  ;;  %v1186_v49 = vadd.f32 %v1826_v15, %v1185_v59  ;;  %v1325_v44 = vmul.f32 %v1826_v15, %v492_v51 }
 0x16b   :  { %v559_v36 = vpop.permute.xlu1 %558  ;;  %v429_v48 = vpop.permute.xlu0 %428  ;;  %v1602_v2 = vsel %vm1546_vm15, %v1514_v57, 0.0  ;;  %v1652_v13 = vsel %vm1546_vm15, %v1636_v12, 0.0  ;;  %v1577_v39 = vrot.slane %v1848_v42, 7  ;;  %v1847_v15 = vsel %vm1545_vm2, 1.0, %v2873_v10 }
 0x16c   :  { %v1421_v5 = vadd.f32 %v1420_v25, %v1279_v11  ;;  %v1482_v20 = vadd.f32 %v1481_v14, %v1325_v44  ;;  %vm789_vm13 = vcmp.ge.f32.partialorder %v559_v36, %v2219_v8  ;;  %vm758_vm14 = vcmp.ge.f32.partialorder %v429_v48, %v2160_v47 }
 0x16d   :  { %v1842_v53 = vsel %vm789_vm13, 1.0, %v2873_v10  ;;  %v1811_v62 = vsel %vm758_vm14, 1.0, %v2873_v10  ;;  %v1617_v23 = vrot.slane %v1602_v2, 7  ;;  %v1667_v21 = vrot.slane %v1652_v13, 7 }
 0x16e   :  { %v1207_v59 = vadd.f32 %v1842_v53, %v1206_v26  ;;  %v1341_v58 = vmul.f32 %v1842_v53, %v559_v36  ;;  %v1166_v7 = vadd.f32 %v1811_v62, %v1165_v32  ;;  %v1310_v17 = vmul.f32 %v1811_v62, %v429_v48 }
 0x16f   :  { %v366_v25 = vpop.permute.xlu1 %365  ;;  %v236_v14 = vpop.permute.xlu0 %235  ;;  %v1515_v62 = vrot.slane %v2886_v45, 2  ;;  %v1518_v3 = vrot.slane %v2886_v45, 5 }
 0x170   :  { %v1503_v30 = vadd.f32 %v1502_v56, %v1341_v58  ;;  %v1462_v50 = vadd.f32 %v1461_v19, %v1310_v17  ;;  %vm743_vm0 = vcmp.ge.f32.partialorder %v366_v25, %v2140_v41  ;;  %vm712_vm1 = vcmp.ge.f32.partialorder %v236_v14, %v2121_v63 }
 0x171   :  { %v1796_v29 = vsel %vm743_vm0, 1.0, %v2873_v10  ;;  %v1765_v26 = vsel %vm712_vm1, 1.0, %v2873_v10 }
 0x172   :  { %v1146_v34 = vadd.f32 %v1796_v29, %v1145_v46  ;;  %v1295_v32 = vmul.f32 %v1796_v29, %v366_v25  ;;  %v1105_v9 = vadd.f32 %v1765_v26, %v1104_v35  ;;  %v1264_v43 = vmul.f32 %v1765_v26, %v236_v14 }
 0x173   :  { %v303_v56 = vpop.permute.xlu1 %302  ;;  %v496_v19 = vpop.permute.xlu0 %495  ;;  %v1516_v25 = vrot.slane %v2886_v45, 3  ;;  %v1638_v14 = vrot.slane %v2645_v28, 3 }
 0x174   :  { %v1442_v61 = vadd.f32 %v1441_v22, %v1295_v32  ;;  %v1401_v24 = vadd.f32 %v1400_v33, %v1264_v43  ;;  %vm728_vm3 = vcmp.ge.f32.partialorder %v303_v56, %v2132_v6  ;;  %vm774_vm4 = vcmp.ge.f32.partialorder %v496_v19, %v2185_v1 }
 0x175   :  { %v1781_v4 = vsel %vm728_vm3, 1.0, %v2873_v10  ;;  %v1827_v55 = vsel %vm774_vm4, 1.0, %v2873_v10  ;;  %v1601_v22 = vsel %vm1545_vm2, %v2886_v45, 0.0  ;;  %v1520_v43 = vrot.slane %v2886_v45, 7 }
 0x176   :  { %v1126_v46 = vadd.f32 %v1781_v4, %v1125_v52  ;;  %v1280_v31 = vmul.f32 %v1781_v4, %v303_v56  ;;  %v2666_v35 = vadd.f32 %v1827_v55, %v1186_v49  ;;  %v1326_v57 = vmul.f32 %v1827_v55, %v496_v19 }
 0x177   :  { %v563_v54 = vpop.permute.xlu1 %562  ;;  %v433_v51 = vpop.permute.xlu0 %432  ;;  %v1651_v52 = vsel %vm1545_vm2, %v2645_v28, 0.0  ;;  %v2685_v48 = vsel %vm1578_vm5, %v1617_v23, %v1601_v22  ;;  %v1641_v55 = vrot.slane %v2645_v28, 6  ;;  %vm1581_vm2 = vcmask 1042434  }
 0x178   :  { %v1422_v33 = vadd.f32 %v1421_v5, %v1280_v31  ;;  %v2670_v18 = vadd.f32 %v1482_v20, %v1326_v57  ;;  %vm790_vm6 = vcmp.ge.f32.partialorder %v563_v54, %v2219_v8  ;;  %vm759_vm7 = vcmp.ge.f32.partialorder %v433_v51, %v2160_v47 }
 0x179   :  { %v1843_v0 = vsel %vm790_vm6, 1.0, %v2873_v10  ;;  %v1812_v27 = vsel %vm759_vm7, 1.0, %v2873_v10  ;;  %v2688_v5 = vsel %vm1578_vm5, %v1577_v39, %v1847_v15  ;;  %v2691_v20 = vsel %vm1578_vm5, %v1667_v21, %v1651_v52 }
 0x17a   :  { %v2680_v11 = vadd.f32 %v1843_v0, %v1207_v59  ;;  %v1342_v49 = vmul.f32 %v1843_v0, %v563_v54  ;;  %v2682_v44 = vadd.f32 %v1812_v27, %v1166_v7  ;;  %v1311_v40 = vmul.f32 %v1812_v27, %v433_v51 }
 0x17b   :  { %v370_v37 = vpop.permute.xlu1 %369  ;;  %v240_v36 = vpop.permute.xlu0 %239  ;;  %v1637_v59 = vrot.slane %v2645_v28, 2  ;;  %vm1584_vm3 = vcmask 1043459  }
 0x17c   :  { %v2693_v38 = vadd.f32 %v1503_v30, %v1342_v49  ;;  %v2695_v60 = vadd.f32 %v1462_v50, %v1311_v40  ;;  %vm744_vm8 = vcmp.ge.f32.partialorder %v370_v37, %v2140_v41  ;;  %vm713_vm9 = vcmp.ge.f32.partialorder %v240_v36, %v2121_v63 }
 0x17d   :  { %v1797_v53 = vsel %vm744_vm8, 1.0, %v2873_v10  ;;  %v1766_v58 = vsel %vm713_vm9, 1.0, %v2873_v10  ;;  %v1517_v63 = vrot.slane %v2886_v45, 4  ;;  %vm1587_vm8 = vcmask 1044484  }
 0x17e   :  { %v2703_v7 = vadd.f32 %v1797_v53, %v1146_v34  ;;  %v1296_v17 = vmul.f32 %v1797_v53, %v370_v37  ;;  %v1106_v16 = vadd.f32 %v1766_v58, %v1105_v9  ;;  %v1265_v12 = vmul.f32 %v1766_v58, %v240_v36 }
 0x17f   :  { %v307_v30 = vpop.permute.xlu1 %306  ;;  %v500_v50 = vpop.permute.xlu0 %499  ;;  %v1519_v9 = vrot.slane %v2886_v45, 6  ;;  %vm1590_vm9 = vcmask 1045509  }
 0x180   :  { %v2709_v29 = vadd.f32 %v1442_v61, %v1296_v17  ;;  %v1107_v26 = vrot.slane %v1106_v16, 4  ;;  %v1402_v32 = vadd.f32 %v1401_v24, %v1265_v12  ;;  %vm729_vm10 = vcmp.ge.f32.partialorder %v307_v30, %v2132_v6 }
 0x181   :  { %v1782_v34 = vsel %vm729_vm10, 1.0, %v2873_v10  ;;  %vm775_vm11 = vcmp.ge.f32.partialorder %v500_v50, %v2185_v1  ;;  %v1639_v24 = vrot.slane %v2645_v28, 4  ;;  %v1640_v6 = vrot.slane %v2645_v28, 5 }
 0x182   :  { %v1108_v42 = vadd.f32 %v1107_v26, %v1106_v16  ;;  %v1403_v2 = vrot.slane %v1402_v32, 4  ;;  %v1127_v13 = vadd.f32 %v1782_v34, %v1126_v46  ;;  %v1281_v56 = vmul.f32 %v1782_v34, %v307_v30 }
 0x183   :  { %v1828_v19 = vsel %vm775_vm11, 1.0, %v2873_v10  ;;  %v567_v61 = vpop.permute.xlu1 %566  ;;  %v437_v4 = vpop.permute.xlu0 %436 }
 0x184   :  { %v1109_v31 = vrot.slane %v1108_v42, 2  ;;  %v1404_v57 = vadd.f32 %v1403_v2, %v1402_v32  ;;  %v1128_v39 = vrot.slane %v1127_v13, 4  ;;  %v1423_v23 = vadd.f32 %v1422_v33, %v1281_v56 }
 0x185   :  { %v1188_v21 = vadd.f32 %v1828_v19, %v2666_v35  ;;  %v1327_v54 = vmul.f32 %v1828_v19, %v500_v50  ;;  %vm791_vm12 = vcmp.ge.f32.partialorder %v567_v61, %v2219_v8  ;;  %vm760_vm13 = vcmp.ge.f32.partialorder %v437_v4, %v2160_v47 }
 0x186   :  { %v1110_v46 = vadd.f32 %v1109_v31, %v1108_v42  ;;  %v1405_v51 = vrot.slane %v1404_v57, 2  ;;  %v1129_v22 = vadd.f32 %v1128_v39, %v1127_v13  ;;  %v1424_v0 = vrot.slane %v1423_v23, 4 }
 0x187   :  { %v1484_v27 = vadd.f32 %v2670_v18, %v1327_v54  ;;  %v1844_v15 = vsel %vm791_vm12, 1.0, %v2873_v10  ;;  %v1813_v52 = vsel %vm760_vm13, 1.0, %v2873_v10  ;;  %v504_v49 = vpop.permute.xlu1 %503  ;;  %v374_v40 = vpop.permute.xlu0 %373  ;;  %v1642_v33 = vrot.slane %v2645_v28, 7 }
 0x188   :  { %v1111_v35 = vrot.slane %v1110_v46, 1  ;;  %v1406_v37 = vadd.f32 %v1405_v51, %v1404_v57  ;;  %v1130_v36 = vrot.slane %v1129_v22, 2  ;;  %v1425_v53 = vadd.f32 %v1424_v0, %v1423_v23 }
 0x189   :  { %v1209_v58 = vadd.f32 %v1844_v15, %v2680_v11  ;;  %v1343_v17 = vmul.f32 %v1844_v15, %v567_v61  ;;  %v1168_v16 = vadd.f32 %v1813_v52, %v2682_v44  ;;  %v1312_v12 = vmul.f32 %v1813_v52, %v437_v4 }
 0x18a   :  { %v1112_v30 = vadd.f32 %v1111_v35, %v1110_v46  ;;  %v1407_v18 = vrot.slane %v1406_v37, 1  ;;  %v1131_v50 = vadd.f32 %v1130_v36, %v1129_v22  ;;  %v1426_v26 = vrot.slane %v1425_v53, 2 }
 0x18b   :  { %v1505_v32 = vadd.f32 %v2693_v38, %v1343_v17  ;;  %v1464_v34 = vadd.f32 %v2695_v60, %v1312_v12  ;;  %vm776_vm14 = vcmp.ge.f32.partialorder %v504_v49, %v2185_v1  ;;  %vm745_vm15 = vcmp.ge.f32.partialorder %v374_v40, %v2140_v41  ;;  %v571_v42 = vpop.permute.xlu1 %570  ;;  %v441_v2 = vpop.permute.xlu0 %440 }
 0x18c   :  { %v1408_v13 = vadd.f32 %v1407_v18, %v1406_v37  ;;  %v1531_v11 = vmul.f32 %v1515_v62, %v1112_v30  ;;  %v1132_v44 = vrot.slane %v1131_v50, 1  ;;  %v1427_v56 = vadd.f32 %v1426_v26, %v1425_v53 }
 0x18d   :  { %v1829_v19 = vsel %vm776_vm14, 1.0, %v2873_v10  ;;  %v1798_v61 = vsel %vm745_vm15, 1.0, %v2873_v10  ;;  %vm792_vm0 = vcmp.ge.f32.partialorder %v571_v42, %v2219_v8  ;;  %vm761_vm1 = vcmp.ge.f32.partialorder %v441_v2, %v2160_v47 }
 0x18e   :  { %v1539_v38 = vadd.f32 1.0, %v1531_v11  ;;  %v1133_v60 = vadd.f32 %v1132_v44, %v1131_v50  ;;  %v1428_v41 = vrot.slane %v1427_v56, 1  ;;  %v1189_v4 = vadd.f32 %v1829_v19, %v1188_v21 }
 0x18f   :  { %v1328_v31 = vmul.f32 %v1829_v19, %v504_v49  ;;  %v1148_v57 = vadd.f32 %v1798_v61, %v2703_v7  ;;  %v1297_v39 = vmul.f32 %v1798_v61, %v374_v40  ;;  %v1845_v23 = vsel %vm792_vm0, 1.0, %v2873_v10  ;;  %v575_v15 = vpop.permute.xlu1 %574  ;;  %v508_v30 = vpop.permute.xlu0 %507 }
 0x190   :  { %vm1547_vm4 = vcmp.gt.f32.partialorder %v1539_v38, %v1408_v13  ;;  %v1429_v54 = vadd.f32 %v1428_v41, %v1427_v56  ;;  %v1532_v46 = vmul.f32 %v1516_v25, %v1133_v60  ;;  %v1210_v51 = vadd.f32 %v1845_v23, %v1209_v58 }
 0x191   :  { %v2744_v22 = vsel %vm1547_vm4, 1.0, %v2873_v10  ;;  %v1603_v0 = vsel %vm1547_vm4, %v1515_v62, 0.0  ;;  %v2750_v21 = vsel %vm1547_vm4, %v1637_v59, 0.0  ;;  %v1485_v7 = vadd.f32 %v1484_v27, %v1328_v31 }
 0x192   :  { %v1580_v52 = vrot.slane %v2744_v22, 6  ;;  %v1619_v49 = vrot.slane %v1603_v0, 6  ;;  %v1669_v40 = vrot.slane %v2750_v21, 6  ;;  %v1540_v35 = vadd.f32 1.0, %v1532_v46 }
 0x193   :  { %v1149_v37 = vrot.slane %v1148_v57, 4  ;;  %v1444_v36 = vadd.f32 %v2709_v29, %v1297_v39  ;;  %v1344_v53 = vmul.f32 %v1845_v23, %v571_v42  ;;  %v1814_v62 = vsel %vm761_vm1, 1.0, %v2873_v10 }
 0x194   :  { %vm1548_vm5 = vcmp.gt.f32.partialorder %v1540_v35, %v1429_v54  ;;  %v1169_v58 = vadd.f32 %v1814_v62, %v1168_v16  ;;  %v1313_v59 = vmul.f32 %v1814_v62, %v441_v2  ;;  %vm793_vm6 = vcmp.ge.f32.partialorder %v575_v15, %v2219_v8 }
 0x195   :  { %v2760_v27 = vsel %vm1548_vm5, 1.0, %v2873_v10  ;;  %v1604_v17 = vsel %vm1548_vm5, %v1516_v25, 0.0  ;;  %v2766_v12 = vsel %vm1548_vm5, %v1638_v14, 0.0  ;;  %v1150_v29 = vadd.f32 %v1149_v37, %v1148_v57 }
 0x196   :  { %v1583_v47 = vrot.slane %v2760_v27, 5  ;;  %v1621_v18 = vrot.slane %v1604_v17, 5  ;;  %v1671_v16 = vrot.slane %v2766_v12, 5  ;;  %v1445_v50 = vrot.slane %v1444_v36, 4 }
 0x197   :  { %v1151_v26 = vrot.slane %v1150_v29, 2  ;;  %v1506_v8 = vadd.f32 %v1505_v32, %v1344_v53  ;;  %v1170_v42 = vrot.slane %v1169_v58, 4  ;;  %v1465_v2 = vadd.f32 %v1464_v34, %v1313_v59 }
 0x198   :  { %v1446_v13 = vadd.f32 %v1445_v50, %v1444_v36  ;;  %v1846_v11 = vsel %vm793_vm6, 1.0, %v2873_v10  ;;  %vm777_vm7 = vcmp.ge.f32.partialorder %v508_v30, %v2185_v1  ;;  %v1620_v25 = vsel %vm1581_vm2, %v1619_v49, %v2685_v48 }
 0x199   :  { %v1152_v14 = vadd.f32 %v1151_v26, %v1150_v29  ;;  %v1171_v44 = vadd.f32 %v1170_v42, %v1169_v58  ;;  %v1466_v56 = vrot.slane %v1465_v2, 4  ;;  %v1211_v19 = vadd.f32 %v1846_v11, %v1210_v51 }
 0x19a   :  { %v1447_v61 = vrot.slane %v1446_v13, 2  ;;  %v1345_v38 = vmul.f32 %v1846_v11, %v575_v15  ;;  %v1830_v60 = vsel %vm777_vm7, 1.0, %v2873_v10  ;;  %v1622_v32 = vsel %vm1584_vm3, %v1621_v18, %v1620_v25 }
 0x19b   :  { %v1153_v41 = vrot.slane %v1152_v14, 1  ;;  %v1172_v34 = vrot.slane %v1171_v44, 2  ;;  %v1467_v31 = vadd.f32 %v1466_v56, %v1465_v2  ;;  %v1212_v57 = vrot.slane %v1211_v19, 4 }
 0x19c   :  { %v1448_v39 = vadd.f32 %v1447_v61, %v1446_v13  ;;  %v1507_v23 = vadd.f32 %v1506_v8, %v1345_v38  ;;  %v1190_v1 = vadd.f32 %v1830_v60, %v1189_v4  ;;  %v1329_v54 = vmul.f32 %v1830_v60, %v508_v30 }
 0x19d   :  { %v1154_v48 = vadd.f32 %v1153_v41, %v1152_v14  ;;  %v1173_v46 = vadd.f32 %v1172_v34, %v1171_v44  ;;  %v1468_v0 = vrot.slane %v1467_v31, 2  ;;  %v1213_v49 = vadd.f32 %v1212_v57, %v1211_v19 }
 0x19e   :  { %v1449_v51 = vrot.slane %v1448_v39, 1  ;;  %v1508_v35 = vrot.slane %v1507_v23, 4  ;;  %v1191_v15 = vrot.slane %v1190_v1, 4  ;;  %v1486_v37 = vadd.f32 %v1485_v7, %v1329_v54 }
 0x19f   :  { %v1533_v36 = vmul.f32 %v1517_v63, %v1154_v48  ;;  %v1174_v53 = vrot.slane %v1173_v46, 1  ;;  %v1469_v62 = vadd.f32 %v1468_v0, %v1467_v31  ;;  %v1214_v58 = vrot.slane %v1213_v49, 2 }
 0x1a0   :  { %v1450_v59 = vadd.f32 %v1449_v51, %v1448_v39  ;;  %v1509_v17 = vadd.f32 %v1508_v35, %v1507_v23  ;;  %v1192_v29 = vadd.f32 %v1191_v15, %v1190_v1  ;;  %v1487_v4 = vrot.slane %v1486_v37, 4  ;;  %v37_v35 = vld [vmem:[#allocation5] sm:$0xff] }
 0x1a1   :  { %v1541_v30 = vadd.f32 1.0, %v1533_v36  ;;  %v1175_v18 = vadd.f32 %v1174_v53, %v1173_v46  ;;  %v1470_v50 = vrot.slane %v1469_v62, 1  ;;  %v1215_v26 = vadd.f32 %v1214_v58, %v1213_v49 }
 0x1a2   :  { %v1510_v8 = vrot.slane %v1509_v17, 2  ;;  %v1193_v42 = vrot.slane %v1192_v29, 2  ;;  %v1488_v2 = vadd.f32 %v1487_v4, %v1486_v37  ;;  %v1582_v7 = vsel %vm1581_vm2, %v1580_v52, %v2688_v5 }
 0x1a3   :  { %vm1549_vm10 = vcmp.gt.f32.partialorder %v1541_v30, %v1450_v59  ;;  %v1471_v13 = vadd.f32 %v1470_v50, %v1469_v62  ;;  %v1534_v11 = vmul.f32 %v1518_v3, %v1175_v18  ;;  %v1216_v25 = vrot.slane %v1215_v26, 1 }
 0x1a4   :  { %v1511_v14 = vadd.f32 %v1510_v8, %v1509_v17  ;;  %v1194_v44 = vadd.f32 %v1193_v42, %v1192_v29  ;;  %v1489_v56 = vrot.slane %v1488_v2, 2  ;;  %v1605_v19 = vsel %vm1549_vm10, %v1517_v63, 0.0 }
 0x1a5   :  { %v1542_v61 = vadd.f32 1.0, %v1534_v11  ;;  %v1217_v38 = vadd.f32 %v1216_v25, %v1215_v26  ;;  %v1623_v60 = vrot.slane %v1605_v19, 4  ;;  %v1851_v22 = vsel %vm1549_vm10, 1.0, %v2873_v10 }
 0x1a6   :  { %v1512_v5 = vrot.slane %v1511_v14, 1  ;;  %v1195_v52 = vrot.slane %v1194_v44, 1  ;;  %v1490_v41 = vadd.f32 %v1489_v56, %v1488_v2  ;;  %v1585_v34 = vsel %vm1584_vm3, %v1583_v47, %v1582_v7 }
 0x1a7   :  { %vm1550_vm11 = vcmp.gt.f32.partialorder %v1542_v61, %v1471_v13  ;;  %v1536_v31 = vmul.f32 %v1520_v43, %v1217_v38  ;;  %vm1593_vm12 = vcmask 1046534   ;;  %v1624_v63 = vsel %vm1587_vm8, %v1623_v60, %v1622_v32 }
 0x1a8   :  { %v1586_v57 = vrot.slane %v1851_v22, 4  ;;  %v1513_v39 = vadd.f32 %v1512_v5, %v1511_v14  ;;  %v1196_v23 = vadd.f32 %v1195_v52, %v1194_v44  ;;  %v1491_v1 = vrot.slane %v1490_v41, 1 }
 0x1a9   :  { %vm1596_vm13 = vcmask 1047559   ;;  %v1606_v54 = vsel %vm1550_vm11, %v1518_v3, 0.0  ;;  %v1544_v48 = vadd.f32 1.0, %v1536_v31  ;;  %v1852_v47 = vsel %vm1550_vm11, 1.0, %v2873_v10 }
 0x1aa   :  { %v1625_v27 = vrot.slane %v1606_v54, 3  ;;  %v1588_v46 = vsel %vm1587_vm8, %v1586_v57, %v1585_v34  ;;  %v1492_v0 = vadd.f32 %v1491_v1, %v1490_v41  ;;  %v1535_v32 = vmul.f32 %v1519_v9, %v1196_v23 }
 0x1ab   :  { %v1589_v49 = vrot.slane %v1852_v47, 3  ;;  %v1655_v51 = vsel %vm1549_vm10, %v1639_v24, 0.0  ;;  %vm1552_vm14 = vcmp.gt.f32.partialorder %v1544_v48, %v1513_v39  ;;  %v1656_v15 = vsel %vm1550_vm11, %v1640_v6, 0.0 }
 0x1ac   :  { %v1626_v3 = vsel %vm1590_vm9, %v1625_v27, %v1624_v63  ;;  %v1670_v37 = vsel %vm1581_vm2, %v1669_v40, %v2691_v20  ;;  %v1543_v36 = vadd.f32 1.0, %v1535_v32  ;;  %v1608_v53 = vsel %vm1552_vm14, %v1520_v43, 0.0 }
 0x1ad   :  { %v1854_v62 = vsel %vm1552_vm14, 1.0, %v2873_v10  ;;  %v1591_v24 = vsel %vm1590_vm9, %v1589_v49, %v1588_v46  ;;  %v1629_v58 = vrot.slane %v1608_v53, 1  ;;  %v1658_v59 = vsel %vm1552_vm14, %v1642_v33, 0.0 }
 0x1ae   :  { %v1672_v6 = vsel %vm1584_vm3, %v1671_v16, %v1670_v37  ;;  %v1692_v17 = vmul.f32 0.5, %v37_v35  ;;  %vm1551_vm15 = vcmp.gt.f32.partialorder %v1543_v36, %v1492_v0  ;;  %v1595_v21 = vrot.slane %v1854_v62, 1 }
 0x1af   :  { %v1673_v20 = vrot.slane %v1655_v51, 4  ;;  %v1675_v40 = vrot.slane %v1656_v15, 3  ;;  %v1607_v43 = vsel %vm1551_vm15, %v1519_v9, 0.0  ;;  %v1853_v29 = vsel %vm1551_vm15, 1.0, %v2873_v10 }
 0x1b0   :  { %v1657_v4 = vsel %vm1551_vm15, %v1641_v55, 0.0  ;;  %v1679_v30 = vrot.slane %v1658_v59, 1  ;;  %v1627_v18 = vrot.slane %v1607_v43, 2  ;;  %v1592_v33 = vrot.slane %v1853_v29, 2 }
 0x1b1   :  { %v1674_v12 = vsel %vm1587_vm8, %v1673_v20, %v1672_v6  ;;  %v1677_v50 = vrot.slane %v1657_v4, 2  ;;  %v1693_v26 = vsub.f32 %v1692_v17, %v2886_v45  ;;  %vm1695_vm0 = vcmp.eq.f32.partialorder %v37_v35, 0.0 }
 0x1b2   :  { %v1676_v16 = vsel %vm1590_vm9, %v1675_v40, %v1674_v12  ;;  %v1628_v8 = vsel %vm1593_vm12, %v1627_v18, %v1626_v3  ;;  %v1594_v42 = vsel %vm1593_vm12, %v1592_v33, %v1591_v24  ;;  %vm1696_vm1 = vcmp.eq.f32.partialorder %v2886_v45, inf }
 0x1b3   :  { %v1678_v9 = vsel %vm1593_vm12, %v1677_v50, %v1676_v16  ;;  %v1630_v10 = vsel %vm1596_vm13, %v1629_v58, %v1628_v8  ;;  %v1597_v28 = vsel %vm1596_vm13, %v1595_v21, %v1594_v42  ;;  %v1694_v2 = vmul.f32 %v1693_v26, %v37_v35  ;;  %vm1697_vm2 = vmand %vm1695_vm0, %vm1696_vm1 }
 0x1b4   :  { %v1680_v55 = vsel %vm1596_vm13, %v1679_v30, %v1678_v9  ;;  %1632 = vadd.xlane.f32.xlu1 %v1630_v10  ;;  %1599 = vadd.xlane.f32.xlu0 %v1597_v28 }
 0x1b5   :  { %v1698_v7 = vsel %vm1697_vm2, 0.0, %v1694_v2 }
 0x1b8   :  { %1682 = vadd.xlane.f32.xlu0 %v1680_v55 }
 0x1bc   :  { %1699 = vadd.xlane.f32.xlu0 %v1698_v7 }
 0x23d   :  { %v1600_v13 = vpop.xlane.xlu0 %1599  ;;  %v1633_v25 = vpop.xlane.xlu1 %1632 }
 0x23e   :  { %v1684_v11 = vmax.f32 %v1600_v13, 1.0  ;;  %v1855_v14 = vadd.f32 -1.0, %v1633_v25 }
 0x240   :  { %1861 = vrcp.f32 %v1684_v11 }
 0x241   :  { %v1683_v61 = vpop.xlane.xlu0 %1682 }
 0x245   :  { %v1700_v22 = vpop.xlane.xlu0 %1699 }
 0x24d   :  { %v1862_v44 = vpop.eup %1861 }
 0x24e   :  { %v1687_v56 = vmul.f32 %v1862_v44, %v1855_v14 }
 0x250   :  { %v1688_v19 = vmul.f32 %v1687_v56, %v1684_v11 }
 0x252   :  { %v1689_v38 = vmul.f32 %v1688_v19, %v1687_v56 }
 0x254   :  { %v1690_v60 = vsub.f32 %v1683_v61, %v1689_v38 }
 0x256   :  { %v1691_v45 = vmul.f32 0.5, %v1690_v60 }
 0x258   :  { %v1701_v5 = vadd.f32 %v1700_v22, %v1691_v45 }
 0x25a   :  { %1702 = vst [vmem:[#allocation7] sm:$0xff] %v1701_v5 }
 0x25b   :  { %1914 = shalt.err (!%p1911_p0)
}
 0x25c   :  { %1712 = dma.vmem_to_hbm [thread:$0]  %s1710_s1, 128, %s2843_s2, [#allocation4]  }
 0x25d   :  { %1927 = dma.done.wait [#allocation4], 128  }
 0x25e   :  { %1928 = vsyncadd [#allocation4], 4294967168 }
 0x25f   :  { %1716 = vsyncpa [#allocation3], 1 }
 0x260   :  { %1717 = vsyncpa [#allocation6], 1 }
 0x261   :  { %1718 = vsyncpa [#allocation4], 1 }

</bundles_post_ra>
